<compile_context>
chip_gen: v7x
topology: tpu7x:2x2x1
jax: 0.10.0
libtpu: 0.0.40
codegen_flags: <defaults>
</compile_context>

<pallas_src>
from functools import partial

import numpy as np
import jax
import jax.numpy as jnp
from jax.experimental import pallas as pl
from jax.experimental.pallas import tpu as pltpu


# --------------------------------- kernel ------------------------------------

def _decoder_kernel(z_ref, m1_ref, m23_ref, m4_ref, mfc_ref, aff_ref, bfc_ref,
                    out_ref, *, compute_dtype):
    f32 = jnp.float32
    cdt = compute_dtype
    aff = aff_ref[...]                                                   # (3, 40*ngf) shifts

    h = jnp.dot(z_ref[...].astype(cdt), m1_ref[...], preferred_element_type=f32)
    h = jnp.maximum(h + aff[0:1], 0.0)                                   # BN1 shift + ReLU
    h = jnp.dot(h.astype(cdt), m23_ref[0], preferred_element_type=f32)   # (B, 20*2ngf)
    h = jnp.maximum(h + aff[1:2], 0.0)                                   # BN2 shift + ReLU
    h = jnp.dot(h.astype(cdt), m23_ref[1], preferred_element_type=f32)   # (B, 40*ngf)
    h = jnp.maximum(h + aff[2:3], 0.0)                                   # BN3 shift + ReLU
    h = jnp.dot(h.astype(cdt), m4_ref[...], preferred_element_type=f32)  # (B, 80*nc)
    h = jnp.tanh(h)
    out = jnp.dot(h.astype(cdt), mfc_ref[...], preferred_element_type=f32) + bfc_ref[...]
    out_ref[...] = out.astype(out_ref.dtype)                             # (B, nc*isize)


# ------------------------------ wrapper helpers -------------------------------

def _round_up(x, m):
    return (x + m - 1) // m * m


def _cdiv(a, b):
    return -(-a // b)


def _const_spec(a):
    nd = a.ndim
    return pl.BlockSpec(a.shape, lambda i, _nd=nd: (0,) * _nd)


def _choose_batch_tiling(n, sublane, cap=512):
    """Pick (batch_block, padded_batch).

    * block is a sublane multiple, as large as possible up to `cap`, so the MXU LHS
      uses 256+ rows on v6e/v7x and per-grid-step overhead is amortised for large N;
    * the grid always has an even number of steps >= 2 so ("parallel",) semantics
      gives both v7x TensorCores work (v5e/v6e have a single TC; the extra padded
      block for tiny N is negligible).
    """
    n_min = _round_up(max(n, 1), sublane)
    steps = 2
    while _cdiv(n_min, steps) > cap:
        steps += 2
    blk = _round_up(_cdiv(n_min, steps), sublane)
    return blk, steps * blk


def _fold_conv_transpose(w, l_in, stride, pad):
    """PyTorch ConvTranspose1d weight (Cin, Cout, K) -> dense (Lin*Cin, Lout*Cout).

    Acts on channel-last activations flattened as index = l*Cin + cin (rows) and
    produces index = t*Cout + cout (cols), t = l*stride - pad + k.
    """
    cin, cout, k = w.shape
    l_out = (l_in - 1) * stride - 2 * pad + k
    pos = np.zeros((k, l_in, l_out), np.float32)
    for tap in range(k):
        for l in range(l_in):
            t = l * stride - pad + tap
            if 0 <= t < l_out:
                pos[tap, l, t] = 1.0
    m = jnp.einsum("klt,iok->lito", jnp.asarray(pos), w)
    return m.reshape(l_in * cin, l_out * cout), l_out


def decoder_forward(z, params, *, use_bf16=True, batch_block_cap=512):
    """z: (N, nz, 1) float32, PyTorch NCL layout -> (N, nc, isize)."""
    n, nz, l_in = z.shape
    assert l_in == 1
    w1, w2, w3, w4 = params["w1"], params["w2"], params["w3"], params["w4"]
    nc = w4.shape[1]
    isize = params["wfc"].shape[0]

    # Fold each ConvTranspose1d into one dense (Lin*Cin, Lout*Cout) operator.
    m1, l1 = _fold_conv_transpose(w1, 1, 1, 0)       # (nz     , 10*4ngf)
    m2, l2 = _fold_conv_transpose(w2, l1, 2, 1)      # (10*4ngf, 20*2ngf)
    m3, l3 = _fold_conv_transpose(w3, l2, 2, 1)      # (20*2ngf, 40*ngf)
    m4, l4 = _fold_conv_transpose(w4, l3, 2, 1)      # (40*ngf , 80*nc)

    # Fold BN *scales* into the deconv output columns (col index = l*C + c -> s[c]);
    # only the shifts stay in the kernel.
    m1 = m1 * jnp.tile(params["s1"], (l1,))[None, :]
    m2 = m2 * jnp.tile(params["s2"], (l2,))[None, :]
    m3 = m3 * jnp.tile(params["s3"], (l3,))[None, :]

    d1, d2, d3, d4 = m1.shape[1], m2.shape[1], m3.shape[1], m4.shape[1]
    assert d1 == d2 == d3                            # 10*4ngf == 20*2ngf == 40*ngf
    m23 = jnp.stack([m2, m3])

    # fc over the length dim, folded so the kernel output is lane-dense (nc*isize):
    #   mfc[(l, c), (c, i)] = wfc[i, l]
    mfc = jnp.einsum("il,cd->lcdi", params["wfc"], jnp.eye(nc, dtype=jnp.float32))
    mfc = mfc.reshape(l4 * nc, nc * isize)
    d5 = mfc.shape[1]
    bfc_flat = jnp.tile(params["bfc"], (nc,))[None, :]                  # (1, nc*isize) f32

    # Remaining BN shifts flattened over (L, C): index l*C + c -> per-channel shift.
    aff = jnp.stack([
        jnp.tile(params["t1"], (l1,)),
        jnp.tile(params["t2"], (l2,)),
        jnp.tile(params["t3"], (l3,)),
    ]).astype(jnp.float32)                                              # (3, 40*ngf)

    # bf16 matmul operands hit the native MXU rate; accumulation stays f32.
    cdt = jnp.bfloat16 if use_bf16 else jnp.float32
    m1, m23, m4, mfc = (a.astype(cdt) for a in (m1, m23, m4, mfc))

    # Batch tiling: large sublane-aligned blocks, even grid length >= 2.
    sublane = 16 if use_bf16 else 8
    blk_b, n_pad = _choose_batch_tiling(n, sublane, cap=batch_block_cap)

    z2 = z[:, :, 0]                                                     # (N, nz) f32
    if n_pad != n:
        z2 = jnp.pad(z2, ((0, n_pad - n), (0, 0)))

    consts = (m1, m23, m4, mfc, aff, bfc_flat)
    in_specs = [pl.BlockSpec((blk_b, nz), lambda i: (i, 0))]
    in_specs += [_const_spec(a) for a in consts]

    # Advisory cost estimate so XLA schedules/overlaps the custom call sensibly.
    flops = 2 * n_pad * (nz * d1 + d1 * d2 + d2 * d3 + d3 * d4 + d4 * d5)
    transcendentals = n_pad * d4                                        # tanh
    const_bytes = sum(int(np.prod(a.shape)) * a.dtype.itemsize for a in consts)
    bytes_accessed = n_pad * (nz + d5) * 4 + const_bytes
    cost = pl.CostEstimate(flops=int(flops),
                           transcendentals=int(transcendentals),
                           bytes_accessed=int(bytes_accessed))

    out_flat = pl.pallas_call(
        partial(_decoder_kernel, compute_dtype=cdt),
        out_shape=jax.ShapeDtypeStruct((n_pad, d5), jnp.float32),
        grid=(n_pad // blk_b,),
        in_specs=in_specs,
        out_specs=pl.BlockSpec((blk_b, d5), lambda i: (i, 0)),
        compiler_params=pltpu.CompilerParams(
            dimension_semantics=("parallel",)),
        cost_estimate=cost,
    )(z2, *consts)

    # (N, nc*isize) is already c-major / i-minor -> cheap contiguous reshape.
    return out_flat[:n].reshape(n, nc, isize)


# ----------------------------- pure-JAX reference -----------------------------

def _conv_transpose1d_ref(x, w, stride, pad):
    # x: (N, Cin, L), w: (Cin, Cout, K) -- PyTorch ConvTranspose1d semantics.
    n, cin, l = x.shape
    _, cout, k = w.shape
    full_len = (l - 1) * stride + k
    full = jnp.zeros((n, cout, full_len), jnp.float32)
    for tap in range(k):
        contrib = jnp.einsum("ncl,co->nol", x, w[:, :, tap])
        full = full.at[:, :, tap:tap + (l - 1) * stride + 1:stride].add(contrib)
    return full[:, :, pad:full_len - pad]


def _decoder_ref(z, params):
    def bn_relu(x, s, t):
        return jnp.maximum(x * s[None, :, None] + t[None, :, None], 0.0)

    h = bn_relu(_conv_transpose1d_ref(z, params["w1"], 1, 0), params["s1"], params["t1"])
    h = bn_relu(_conv_transpose1d_ref(h, params["w2"], 2, 1), params["s2"], params["t2"])
    h = bn_relu(_conv_transpose1d_ref(h, params["w3"], 2, 1), params["s3"], params["t3"])
    h = jnp.tanh(_conv_transpose1d_ref(h, params["w4"], 2, 1))
    return jnp.einsum("ncl,il->nci", h, params["wfc"]) + params["bfc"][None, None, :]


# ----------------------------------- main -------------------------------------

if __name__ == "__main__":
    N, nz, ngf, nc, isize = 4, 8, 8, 2, 64
    c1, c2, c3 = 4 * ngf, 2 * ngf, ngf

    key = jax.random.PRNGKey(0)
    ks = jax.random.split(key, 12)

    def bn_affine(k, c):
        k1, k2, k3, k4 = jax.random.split(k, 4)
        gamma = 1.0 + 0.1 * jax.random.normal(k1, (c,), jnp.float32)
        beta = 0.1 * jax.random.normal(k2, (c,), jnp.float32)
        mean = 0.1 * jax.random.normal(k3, (c,), jnp.float32)
        var = jax.random.uniform(k4, (c,), jnp.float32, 0.5, 1.5)
        scale = gamma / jnp.sqrt(var + 1e-5)
        return scale, beta - mean * scale

    s1, t1 = bn_affine(ks[4], c1)
    s2, t2 = bn_affine(ks[5], c2)
    s3, t3 = bn_affine(ks[6], c3)

    params = dict(
        w1=0.2 * jax.random.normal(ks[0], (nz, c1, 10), jnp.float32),
        w2=0.2 * jax.random.normal(ks[1], (c1, c2, 4), jnp.float32),
        w3=0.2 * jax.random.normal(ks[2], (c2, c3, 4), jnp.float32),
        w4=0.2 * jax.random.normal(ks[3], (c3, nc, 4), jnp.float32),
        s1=s1, t1=t1, s2=s2, t2=t2, s3=s3, t3=t3,
        wfc=0.1 * jax.random.normal(ks[7], (isize, 80), jnp.float32),
        bfc=0.1 * jax.random.normal(ks[8], (isize,), jnp.float32),
    )

    z = jax.random.normal(ks[9], (N, nz, 1), jnp.float32)

    ref = jax.block_until_ready(_decoder_ref(z, params))

    # Exact-semantics path (f32 matmul operands).
    out_f32 = jax.block_until_ready(decoder_forward(z, params, use_bf16=False))
    assert out_f32.shape == (N, nc, isize), out_f32.shape
    err_f32 = float(jnp.max(jnp.abs(out_f32 - ref)))

    # Optimised path (bf16 matmul operands, f32 accumulation).
    out_bf16 = jax.block_until_ready(decoder_forward(z, params, use_bf16=True))
    assert out_bf16.shape == (N, nc, isize), out_bf16.shape
    err_bf16 = float(jnp.max(jnp.abs(out_bf16 - ref)))

    if not np.isfinite(err_f32) or err_f32 > 1e-2:
        raise AssertionError(f"f32 path mismatch vs reference: max abs err = {err_f32}")
    if not np.isfinite(err_bf16) or err_bf16 > 3e-2:
        raise AssertionError(f"bf16 path mismatch vs reference: max abs err = {err_bf16}")

    print("KERNEL_OK")
</pallas_src>

<mosaic_0001>
module attributes {stable_mosaic.version = 11 : i64} {
  func.func @_decoder_kernel(%arg0: i32, %arg1: memref<8x8xf32, #tpu.memory_space<vmem>>, %arg2: memref<8x320xf32, #tpu.memory_space<vmem>>, %arg3: memref<2x320x320xf32, #tpu.memory_space<vmem>>, %arg4: memref<320x160xf32, #tpu.memory_space<vmem>>, %arg5: memref<160x128xf32, #tpu.memory_space<vmem>>, %arg6: memref<3x320xf32, #tpu.memory_space<vmem>>, %arg7: memref<1x128xf32, #tpu.memory_space<vmem>>, %arg8: memref<8x128xf32, #tpu.memory_space<vmem>>) attributes {dimension_semantics = [#tpu.dimension_semantics<parallel>], iteration_bounds = array<i64: 2>, scalar_prefetch = 0 : i64, scratch_operands = 0 : i64, tpu.core_type = #tpu.core_type<tc>, window_params = [{transform_indices = @transform_0, window_bounds = array<i64: 8, 8>}, {pipeline_mode = #tpu.pipeline_mode<synchronous>, transform_indices = @transform_1, window_bounds = array<i64: 8, 320>}, {pipeline_mode = #tpu.pipeline_mode<synchronous>, transform_indices = @transform_2, window_bounds = array<i64: 2, 320, 320>}, {pipeline_mode = #tpu.pipeline_mode<synchronous>, transform_indices = @transform_3, window_bounds = array<i64: 320, 160>}, {pipeline_mode = #tpu.pipeline_mode<synchronous>, transform_indices = @transform_4, window_bounds = array<i64: 160, 128>}, {pipeline_mode = #tpu.pipeline_mode<synchronous>, transform_indices = @transform_5, window_bounds = array<i64: 3, 320>}, {pipeline_mode = #tpu.pipeline_mode<synchronous>, transform_indices = @transform_6, window_bounds = array<i64: 1, 128>}, {transform_indices = @transform_7, window_bounds = array<i64: 8, 128>}]} {
    %c0 = arith.constant 0 : index
    %c0_0 = arith.constant 0 : index
    %0 = vector.load %arg6[%c0, %c0_0] : memref<3x320xf32, #tpu.memory_space<vmem>>, vector<3x320xf32>
    %c0_1 = arith.constant 0 : index
    %c0_2 = arith.constant 0 : index
    %1 = vector.load %arg1[%c0_1, %c0_2] : memref<8x8xf32, #tpu.memory_space<vmem>>, vector<8x8xf32>
    %c0_3 = arith.constant 0 : index
    %c0_4 = arith.constant 0 : index
    %2 = vector.load %arg2[%c0_3, %c0_4] : memref<8x320xf32, #tpu.memory_space<vmem>>, vector<8x320xf32>
    %cst = arith.constant dense<0.000000e+00> : vector<8x320xf32>
    %3 = tpu.matmul %1, %2, %cst {dimension_numbers = #tpu.dot_dimension_numbers<[1], [0], [0], [1], [0, 0, 1, 1], [], []>} : vector<8x8xf32>, vector<8x320xf32>, vector<8x320xf32> -> vector<8x320xf32>
    %4 = vector.extract_strided_slice %0 {offsets = [0, 0], sizes = [1, 320], strides = [1, 1]} : vector<3x320xf32> to vector<1x320xf32>
    %5 = vector.broadcast %4 : vector<1x320xf32> to vector<8x320xf32>
    %6 = arith.addf %3, %5 : vector<8x320xf32>
    %cst_5 = arith.constant 0.000000e+00 : f32
    %7 = vector.broadcast %cst_5 : f32 to vector<8x320xf32>
    %8 = arith.maximumf %6, %7 : vector<8x320xf32>
    %c0_6 = arith.constant 0 : index
    %c0_7 = arith.constant 0 : index
    %c0_8 = arith.constant 0 : index
    %9 = vector.load %arg3[%c0_6, %c0_7, %c0_8] : memref<2x320x320xf32, #tpu.memory_space<vmem>>, vector<1x320x320xf32>
    %10 = vector.shape_cast %9 : vector<1x320x320xf32> to vector<320x320xf32>
    %cst_9 = arith.constant dense<0.000000e+00> : vector<8x320xf32>
    %11 = tpu.matmul %8, %10, %cst_9 {dimension_numbers = #tpu.dot_dimension_numbers<[1], [0], [0], [1], [0, 0, 1, 1], [], []>} : vector<8x320xf32>, vector<320x320xf32>, vector<8x320xf32> -> vector<8x320xf32>
    %12 = vector.extract_strided_slice %0 {offsets = [1, 0], sizes = [1, 320], strides = [1, 1]} : vector<3x320xf32> to vector<1x320xf32>
    %13 = vector.broadcast %12 : vector<1x320xf32> to vector<8x320xf32>
    %14 = arith.addf %11, %13 : vector<8x320xf32>
    %cst_10 = arith.constant 0.000000e+00 : f32
    %15 = vector.broadcast %cst_10 : f32 to vector<8x320xf32>
    %16 = arith.maximumf %14, %15 : vector<8x320xf32>
    %c1 = arith.constant 1 : index
    %c0_11 = arith.constant 0 : index
    %c0_12 = arith.constant 0 : index
    %17 = vector.load %arg3[%c1, %c0_11, %c0_12] : memref<2x320x320xf32, #tpu.memory_space<vmem>>, vector<1x320x320xf32>
    %18 = vector.shape_cast %17 : vector<1x320x320xf32> to vector<320x320xf32>
    %cst_13 = arith.constant dense<0.000000e+00> : vector<8x320xf32>
    %19 = tpu.matmul %16, %18, %cst_13 {dimension_numbers = #tpu.dot_dimension_numbers<[1], [0], [0], [1], [0, 0, 1, 1], [], []>} : vector<8x320xf32>, vector<320x320xf32>, vector<8x320xf32> -> vector<8x320xf32>
    %20 = vector.extract_strided_slice %0 {offsets = [2, 0], sizes = [1, 320], strides = [1, 1]} : vector<3x320xf32> to vector<1x320xf32>
    %21 = vector.broadcast %20 : vector<1x320xf32> to vector<8x320xf32>
    %22 = arith.addf %19, %21 : vector<8x320xf32>
    %cst_14 = arith.constant 0.000000e+00 : f32
    %23 = vector.broadcast %cst_14 : f32 to vector<8x320xf32>
    %24 = arith.maximumf %22, %23 : vector<8x320xf32>
    %c0_15 = arith.constant 0 : index
    %c0_16 = arith.constant 0 : index
    %25 = vector.load %arg4[%c0_15, %c0_16] : memref<320x160xf32, #tpu.memory_space<vmem>>, vector<320x160xf32>
    %cst_17 = arith.constant dense<0.000000e+00> : vector<8x160xf32>
    %26 = tpu.matmul %24, %25, %cst_17 {dimension_numbers = #tpu.dot_dimension_numbers<[1], [0], [0], [1], [0, 0, 1, 1], [], []>} : vector<8x320xf32>, vector<320x160xf32>, vector<8x160xf32> -> vector<8x160xf32>
    %27 = math.tanh %26 : vector<8x160xf32>
    %c0_18 = arith.constant 0 : index
    %c0_19 = arith.constant 0 : index
    %28 = vector.load %arg5[%c0_18, %c0_19] : memref<160x128xf32, #tpu.memory_space<vmem>>, vector<160x128xf32>
    %cst_20 = arith.constant dense<0.000000e+00> : vector<8x128xf32>
    %29 = tpu.matmul %27, %28, %cst_20 {dimension_numbers = #tpu.dot_dimension_numbers<[1], [0], [0], [1], [0, 0, 1, 1], [], []>} : vector<8x160xf32>, vector<160x128xf32>, vector<8x128xf32> -> vector<8x128xf32>
    %c0_21 = arith.constant 0 : index
    %c0_22 = arith.constant 0 : index
    %30 = vector.load %arg7[%c0_21, %c0_22] : memref<1x128xf32, #tpu.memory_space<vmem>>, vector<1x128xf32>
    %31 = vector.broadcast %30 : vector<1x128xf32> to vector<8x128xf32>
    %32 = arith.addf %29, %31 : vector<8x128xf32>
    %c0_23 = arith.constant 0 : index
    %c0_24 = arith.constant 0 : index
    %33 = vector.load %arg8[%c0_23, %c0_24] : memref<8x128xf32, #tpu.memory_space<vmem>>, vector<8x128xf32>
    tpu.vector_store %arg8[%c0_23, %c0_24], %32 {strides = array<i32>} : memref<8x128xf32, #tpu.memory_space<vmem>>, vector<8x128xf32>,
    return
  }
  func.func @transform_0(%arg0: i32) -> (i32, i32) {
    %c0_i32 = arith.constant 0 : i32
    %c0_i32_0 = arith.constant 0 : i32
    return %arg0, %c0_i32 : i32, i32
  }
  func.func @transform_1(%arg0: i32) -> (i32, i32) {
    %c0_i32 = arith.constant 0 : i32
    %c0_i32_0 = arith.constant 0 : i32
    %c0_i32_1 = arith.constant 0 : i32
    return %c0_i32, %c0_i32_0 : i32, i32
  }
  func.func @transform_2(%arg0: i32) -> (i32, i32, i32) {
    %c0_i32 = arith.constant 0 : i32
    %c0_i32_0 = arith.constant 0 : i32
    %c0_i32_1 = arith.constant 0 : i32
    %c0_i32_2 = arith.constant 0 : i32
    return %c0_i32, %c0_i32_0, %c0_i32_1 : i32, i32, i32
  }
  func.func @transform_3(%arg0: i32) -> (i32, i32) {
    %c0_i32 = arith.constant 0 : i32
    %c0_i32_0 = arith.constant 0 : i32
    %c0_i32_1 = arith.constant 0 : i32
    return %c0_i32, %c0_i32_0 : i32, i32
  }
  func.func @transform_4(%arg0: i32) -> (i32, i32) {
    %c0_i32 = arith.constant 0 : i32
    %c0_i32_0 = arith.constant 0 : i32
    %c0_i32_1 = arith.constant 0 : i32
    return %c0_i32, %c0_i32_0 : i32, i32
  }
  func.func @transform_5(%arg0: i32) -> (i32, i32) {
    %c0_i32 = arith.constant 0 : i32
    %c0_i32_0 = arith.constant 0 : i32
    %c0_i32_1 = arith.constant 0 : i32
    return %c0_i32, %c0_i32_0 : i32, i32
  }
  func.func @transform_6(%arg0: i32) -> (i32, i32) {
    %c0_i32 = arith.constant 0 : i32
    %c0_i32_0 = arith.constant 0 : i32
    %c0_i32_1 = arith.constant 0 : i32
    return %c0_i32, %c0_i32_0 : i32, i32
  }
  func.func @transform_7(%arg0: i32) -> (i32, i32) {
    %c0_i32 = arith.constant 0 : i32
    %c0_i32_0 = arith.constant 0 : i32
    return %arg0, %c0_i32 : i32, i32
  }
}

</mosaic_0001>

<bundles_post_ra>
// kernel: tpu_custom_call.1
= control target key start
LH: loop header
LB: loop body
LE: loop exit
PB: predicated region body
PF: predicated region fallthrough
CT: control target
= control target key end

     0   :  { %12 = vsyncpa [#allocation3], 0  ;;  %s3018_s0 = inlined_call_operand.vmem [shape: f32[16,8], index: 0, kind: input, shape index: {}]   ;;  %s3019_s1 = inlined_call_operand.vmem [shape: f32[8,320], index: 1, kind: input, shape index: {}]   ;;  %s3020_s2 = inlined_call_operand.hbm [shape: f32[2,320,320], index: 2, kind: input, shape index: {}]   ;;  %s3021_s3 = inlined_call_operand.vmem [shape: f32[320,160], index: 3, kind: input, shape index: {}]   ;;  %s3022_s4 = inlined_call_operand.vmem [shape: f32[160,128], index: 4, kind: input, shape index: {}]   ;;  %s3023_s5 = inlined_call_operand.vmem [shape: f32[3,320], index: 5, kind: input, shape index: {}]   ;;  %s3024_s6 = inlined_call_operand.vmem [shape: f32[1,128], index: 6, kind: input, shape index: {}]   ;;  %s3025_s7 = inlined_call_operand.hbm [shape: f32[16,128], index: 7, kind: output, shape index: {}]  }
   0x1   :  { %13 = vsyncpa [#allocation4], 0 }
   0x2   :  { %15 = vsyncpa [#allocation4 + $0x1], 0  ;;  %s2484_s24 = smov 0   ;;  %s2486_s25 = smov 0  }
   0x3   :  { %s2488_s26 = smov 0   ;;  %s2490_s27 = smov 0  }
   0x4 LB: > { %s2505_s28 = sadd.s32 4294967295, %s2435_s27   ;;  %s1758_s29 = sadd.s32 4294967294, %s2435_s27   ;;  %s2435_s27 = sphi %s2490_s27, %s3041_s27   ;;  %s2431_s26 = sphi %s2488_s26, %s3040_s26   ;;  %s2427_s25 = sphi %s2486_s25, %s3039_s25   ;;  %s2423_s24 = sphi %s2484_s24, %s3038_s24  }
   0x5   : > { %s2509_s30 = sadd.s32 1, %s2435_s27   ;;  %s180_s8 = sadd.s32 1, %s2431_s26 }
   0x6   : > { %s177_s9 = ssub.s32 %s2435_s27, %s2509_s30  ;;  %p190_p0 = scmp.ne.s32.totalorder %s2431_s26, %s2427_s25 }
   0x7   : > { %p178_p1 = scmp.eq.s32.totalorder %s177_s9, 0  ;;  %p191_p2 = scmp.eq.s32.totalorder %s2505_s28, 1 }
   0x8   : > { %p196_p3 = scmp.ne.s32.totalorder %s2427_s25, %s2423_s24  ;;  %p197_p4 = scmp.eq.s32.totalorder %s1758_s29, 1 }
   0x9   : > { %s2520_s10 = scalar_select %p178_p1, %s2431_s26, %s180_s8  }
   0xa   : > { %p2522_p5 = por %p191_p2, %p190_p0  ;;  %p2526_p6 = por %p197_p4, %p196_p3 }
   0xb   : > { %p1759_p7 = scmp.ge.s32.totalorder %s2435_s27, 1  ;;  %p204_p8 = scmp.lt.s32.totalorder %s2435_s27, 3 }
   0xc   : > { %s3029_s11 = scalar_select %p2522_p5, 1, 0 }
   0xd   : > { %s3030_s12 = scalar_select %p2526_p6, 1, 0 }
   0xe   : > { %p3026_p9 = scmp.eq.s32.totalorder %s2505_s28, 0  ;;  %p2533_p10 = pnand %p1759_p7, %p204_p8 }
   0xf   : > { %s2437_s14 = smov [#allocation2]   ;;  %s2341_s19 = scalar_lea.hbm %s3020_s2, 30720 }
  0x10   : > { %s3031_s13 = scalar_select %p2533_p10, 1, 0 }
  0x11   : > { %s219_s15 = sshll.u32 %s2437_s14, 4  ;;  %p2286_p11 = pneg %p2533_p10  ;;  %s220_s15 = int_to_ptr.vmem [resolvable:$true] %s219_s15 }
  0x12   : > { %p2342_p13 = scmp.ne.s32.totalorder %s3020_s2, %s2341_s19  ;;  %p2348_p3 = scmp.lt.u32.totalorder %s2341_s19, %s3020_s2 }
  0x13   : > { %p2541_p12 = pnand %p3026_p9, %p2286_p11 }
  0x15   : > { %p2343_p0 = pneg %p2541_p12 }
  0x17   : > { %p2344_p1 = pnand %p2343_p0, %p2342_p13 }
  0x19   : > { %p2345_p2 = pneg %p2344_p1 }
  0x1b   : > { %p2350_p4 = pnand %p2348_p3, %p2345_p2 }
  0x1d   : > { %2353 = shalt.err (!%p2350_p4)
}
  0x1e   : > { %s2354_s29 = scalar_lea.vmem %s220_s15, 30720  ;;  %p2362_p9 = scmp.lt.s32.totalorder %s220_s15, %s220_s15 }
  0x1f   : > { %p2355_p7 = scmp.ne.s32.totalorder %s220_s15, %s2354_s29  ;;  %p2363_p6 = scmp.lt.s32.totalorder %s2354_s29, %s2354_s29 }
  0x21   : > { %p2357_p8 = pnand %p2355_p7, %p2343_p0  ;;  %p2364_p5 = por %p2363_p6, %p2362_p9 }
  0x23   : > { %p2358_p11 = pneg %p2357_p8 }
  0x25   : > { %p2365_p10 = pnand %p2364_p5, %p2358_p11 }
  0x27   : > { %2368 = shalt.err (!%p2365_p10)
}
  0x28   : > { %s2438_s8 = smov 384   ;;  %s2439_s9 = smov 24  }
  0x29   : > { %2289 = dma.hbm_to_vmem [thread:$0]  (!%p2541_p12), %s3020_s2, 30720, %s220_s15, [#allocation3], %s2438_s8, %s2438_s8, %s2439_s9  }
  0x2a   : > { %p3033_p13 = scmp.ne.s32.totalorder %s3031_s13, 0 }
  0x2b   : > { %p3034_p1 = scmp.eq.s32.totalorder (!%p3033_p13), %s2505_s28, 0 }
  0x2c   : > { %254 = sbr.rel (%p3033_p13) target bundleno = 1230 (0x4ce), region = 48 }
  0x33   : > { %2414 = dma.done.wait (%p3034_p1), [#allocation3], 30720   ;;  %p3035_p0 = pmov %p3034_p1 }
  0x34   : > { %p285_p5 = scmp.lt.s32.totalorder %s2505_s28, 1  ;;  %v2440_v0 = vmov 0.0   ;;  %v293_v1 = vld [vmem:[%s3019_s1 + $0x8] sm:$0xff]  ;;  %v292_v2 = vld [vmem:[%s3019_s1] sm:$0xff]  ;;  %vm324_vm0 = vcmask 64512   ;;  %v294_v4 = vld [vmem:[%s3019_s1 + $0x10] sm:$0xff] }
  0x35   : > { %2416 = vsyncadd (%p3035_p0), [#allocation3], 4294936576  ;;  %392 = vmatprep.mubr.f32.mxu1 %v2440_v0  ;;  %328 = vmatprep.subr.mxu1 %v293_v1  ;;  %v473_v5 = vld [vmem:[#allocation2 + $0x8] sm:$0xff]  ;;  %v476_v6 = vld [vmem:[#allocation2 + $0x20] sm:$0xff]  ;;  %vm2441_vm1 = vmmov 0   ;;  %vm619_vm2 = vcmask 523264  }
  0x36   : > { %s286_s16 = scalar_select %p285_p5, %s2505_s28, 1  ;;  %329 = vmatpush1.msra.mxu1 %v292_v2  ;;  %v1912_v7 = vpack.c.bf16 %v476_v6, %v473_v5  ;;  %v472_v8 = vld [vmem:[#allocation2] sm:$0xff]  ;;  %v475_v9 = vld [vmem:[#allocation2 + $0x18] sm:$0xff]  ;;  %v482_v12 = vld [vmem:[#allocation2 + $0x50] sm:$0xff]  ;;  %vm1598_vm3 = vcmask 261120  }
  0x37   : > { %v479_v10 = vld [vmem:[#allocation2 + $0x38] sm:$0xff]  ;;  %1869 = vmatprep.subr.mxu1 %v2440_v0  ;;  %v1914_v11 = vpack.c.bf16 %v475_v9, %v472_v8  ;;  %v478_v13 = vld [vmem:[#allocation2 + $0x30] sm:$0xff]  ;;  %v481_v14 = vld [vmem:[#allocation2 + $0x48] sm:$0xff]  ;;  %s282_s29 = sand.u32 1, %s2427_s25   ;;  %s1776_s17 = sshll.u32 %s2505_s28, 7 }
  0x38   : > { %s1765_s18 = sshll.u32 %s286_s16, 3  ;;  %v1916_v15 = vpack.c.bf16 %v482_v12, %v479_v10  ;;  %v485_v16 = vld [vmem:[#allocation2 + $0x68] sm:$0xff]  ;;  %v488_v17 = vld [vmem:[#allocation2 + $0x80] sm:$0xff]  ;;  %1913 = vmatprep.subr.bf16.mxu0 %v1912_v7  ;;  %v1918_v18 = vpack.c.bf16 %v481_v14, %v478_v13  ;;  %v487_v21 = vld [vmem:[#allocation2 + $0x78] sm:$0xff]  ;;  %s1764_s8 = sshll.u32 %s282_s29, 3 }
  0x39   : > { %s288_s15 = scalar_lea.vmem %s3018_s0, %s1765_s18  ;;  %1915 = vmatpush1.bf16.msra.mxu0 %v1914_v11  ;;  %v1920_v19 = vpack.c.bf16 %v488_v17, %v485_v16  ;;  %v484_v20 = vld [vmem:[#allocation2 + $0x60] sm:$0xff]  ;;  %v491_v22 = vld [vmem:[#allocation2 + $0x98] sm:$0xff]  ;;  %v494_v23 = vld [vmem:[#allocation2 + $0xb0] sm:$0xff]  ;;  %s284_s16 = scalar_lea.vmem [#allocation5], %s1764_s8 }
  0x3a   : > { %v291_v3 = vld [vmem:[%s288_s15] sm:$0xff]  ;;  %1917 = vmatprep.subr.bf16.mxu0 %v1916_v15  ;;  %v1922_v24 = vpack.c.bf16 %v487_v21, %v484_v20  ;;  %v1924_v25 = vpack.c.bf16 %v494_v23, %v491_v22  ;;  %v493_v27 = vld [vmem:[#allocation2 + $0xa8] sm:$0xff]  ;;  %v500_v29 = vld [vmem:[#allocation2 + $0xe0] sm:$0xff]  ;;  %s1687_s18 = sshll.u32 %s284_s16, 4  ;;  %s2976_s15 = scalar_lea.hbm %s3025_s7, %s1776_s17  ;;  %s2978_s18 = int_to_ptr.vmem [resolvable:$true] %s1687_s18 }
  0x3b   : > { %1766 = vmatmul.mubr.msk.f32.vlgmr.msra.gmra.mrb[0].mxu1 %vm324_vm0, %v291_v3  ;;  %v490_v26 = vld [vmem:[#allocation2 + $0x90] sm:$0xff]  ;;  %v497_v28 = vld [vmem:[#allocation2 + $0xc8] sm:$0xff]  ;;  %v496_v32 = vld [vmem:[#allocation2 + $0xc0] sm:$0xff]  ;;  %s1674_s13 = scalar_lea.sflag [#allocation4], %s282_s29  ;;  %s2369_s21 = scalar_lea.vmem %s2978_s18, 128 }
  0x3c   : > { %1870 = vmatpush3.msra.mxu1 %v294_v4  ;;  %1871 = vmatprep.mubr.msk.f32.mxu1 %vm2441_vm1, %v2440_v0  ;;  %v1926_v30 = vpack.c.bf16 %v493_v27, %v490_v26  ;;  %v1928_v31 = vpack.c.bf16 %v500_v29, %v497_v28  ;;  %v499_v33 = vld [vmem:[#allocation2 + $0xd8] sm:$0xff]  ;;  %v506_v35 = vld [vmem:[#allocation2 + $0x110] sm:$0xff]  ;;  %v505_v38 = vld [vmem:[#allocation2 + $0x108] sm:$0xff]  ;;  %p2370_p6 = scmp.ne.s32.totalorder %s2978_s18, %s2369_s21  ;;  %p3036_p9 = scmp.ne.s32.totalorder %s3029_s11, 0 }
  0x3d   : > { %1919 = vmatpush1.bf16.msra.mxu0 %v1918_v18  ;;  %v503_v34 = vld [vmem:[#allocation2 + $0xf8] sm:$0xff]  ;;  %v1930_v36 = vpack.c.bf16 %v499_v33, %v496_v32  ;;  %v502_v37 = vld [vmem:[#allocation2 + $0xf0] sm:$0xff]  ;;  %v569_v39 = vld [vmem:[#allocation2 + $0x308] sm:$0xff]  ;;  %s2443_s28 = smov [#allocation5]  }
  0x3e   : > { %1921 = vmatprep.subr.bf16.mxu0 %v1920_v19  ;;  %v1932_v40 = vpack.c.bf16 %v506_v35, %v503_v34  ;;  %v572_v41 = vld [vmem:[#allocation2 + $0x320] sm:$0xff]  ;;  %v571_v43 = vld [vmem:[#allocation2 + $0x318] sm:$0xff]  ;;  %v509_v44 = vld [vmem:[#allocation2 + $0x128] sm:$0xff]  ;;  %v1934_v50 = vpack.c.bf16 %v505_v38, %v502_v37  ;;  %p2371_p10 = pnand %p2370_p6, %p3036_p9  ;;  %s2373_s22 = sshll.u32 %s2443_s28, 4  ;;  %s2374_s22 = int_to_ptr.vmem [resolvable:$false] %s2373_s22 }
  0x3f   : > { %1872 = vmatmul.mubr.msk.f32.vlgmr.msra.gmra.mrb[2].mxu1 %vm324_vm0, %v291_v3  ;;  %v568_v42 = vld [vmem:[#allocation2 + $0x300] sm:$0xff]  ;;  %v1976_v46 = vpack.c.bf16 %v572_v41, %v569_v39  ;;  %v575_v48 = vld [vmem:[#allocation2 + $0x338] sm:$0xff]  ;;  %v578_v49 = vld [vmem:[#allocation2 + $0x350] sm:$0xff]  ;;  %s2375_s23 = scalar_lea.vmem %s2374_s22, 256  ;;  %p2376_p2 = scmp.lt.s32.totalorder %s2978_s18, %s2374_s22 }
  0x40   : > { %758 = vmatprep.mubr.f32.mxu1 %v2440_v0  ;;  %v512_v45 = vld [vmem:[#allocation2 + $0x140] sm:$0xff]  ;;  %v1978_v47 = vpack.c.bf16 %v571_v43, %v568_v42  ;;  %v1980_v51 = vpack.c.bf16 %v578_v49, %v575_v48  ;;  %v574_v52 = vld [vmem:[#allocation2 + $0x330] sm:$0xff]  ;;  %v577_v53 = vld [vmem:[#allocation2 + $0x348] sm:$0xff]  ;;  %p2372_p12 = pneg %p2371_p10  ;;  %p2377_p3 = scmp.lt.s32.totalorder %s2375_s23, %s2369_s21 }
  0x41   : > { %1923 = vmatpush1.bf16.msra.mxu0 %v1922_v24  ;;  %1977 = vmatprep.subr.bf16.mxu1 %v1976_v46  ;;  %v1936_v54 = vpack.c.bf16 %v512_v45, %v509_v44  ;;  %v508_v55 = vld [vmem:[#allocation2 + $0x120] sm:$0xff]  ;;  %v511_v56 = vld [vmem:[#allocation2 + $0x138] sm:$0xff]  ;;  %v1982_v57 = vpack.c.bf16 %v577_v53, %v574_v52  ;;  %v518_v59 = vld [vmem:[#allocation2 + $0x170] sm:$0xff] }
  0x42   : > { %1925 = vmatprep.subr.bf16.mxu0 %v1924_v25  ;;  %1979 = vmatpush1.bf16.msra.mxu1 %v1978_v47  ;;  %v515_v58 = vld [vmem:[#allocation2 + $0x158] sm:$0xff]  ;;  %v1938_v60 = vpack.c.bf16 %v511_v56, %v508_v55  ;;  %v514_v62 = vld [vmem:[#allocation2 + $0x150] sm:$0xff]  ;;  %v517_v63 = vld [vmem:[#allocation2 + $0x168] sm:$0xff]  ;;  %p2378_p4 = por %p2377_p3, %p2376_p2 }
  0x43   : > { %1981 = vmatprep.subr.bf16.mxu1 %v1980_v51  ;;  %v1940_v61 = vpack.c.bf16 %v518_v59, %v515_v58  ;;  %v521_v1 = vld [vmem:[#allocation2 + $0x188] sm:$0xff]  ;;  %v524_v2 = vld [vmem:[#allocation2 + $0x1a0] sm:$0xff]  ;;  %v1942_v3 = vpack.c.bf16 %v517_v63, %v514_v62  ;;  %v523_v6 = vld [vmem:[#allocation2 + $0x198] sm:$0xff] }
  0x44   : > { %v1944_v4 = vpack.c.bf16 %v524_v2, %v521_v1  ;;  %v520_v5 = vld [vmem:[#allocation2 + $0x180] sm:$0xff]  ;;  %v527_v7 = vld [vmem:[#allocation2 + $0x1b8] sm:$0xff]  ;;  %v530_v8 = vld [vmem:[#allocation2 + $0x1d0] sm:$0xff]  ;;  %p2379_p7 = pnand %p2378_p4, %p2372_p12 }
  0x45   : > { %1927 = vmatpush1.bf16.msra.mxu0 %v1926_v30  ;;  %v1946_v9 = vpack.c.bf16 %v523_v6, %v520_v5  ;;  %v1948_v10 = vpack.c.bf16 %v530_v8, %v527_v7  ;;  %v526_v11 = vld [vmem:[#allocation2 + $0x1b0] sm:$0xff]  ;;  %v529_v12 = vld [vmem:[#allocation2 + $0x1c8] sm:$0xff]  ;;  %v536_v14 = vld [vmem:[#allocation2 + $0x200] sm:$0xff]  ;;  %v297_v5 = vlaneseq }
  0x46   : > { %1929 = vmatprep.subr.bf16.mxu0 %v1928_v31  ;;  %1983 = vmatpush1.bf16.msra.mxu1 %v1982_v57  ;;  %v533_v13 = vld [vmem:[#allocation2 + $0x1e8] sm:$0xff]  ;;  %v1950_v15 = vpack.c.bf16 %v529_v12, %v526_v11  ;;  %v532_v17 = vld [vmem:[#allocation2 + $0x1e0] sm:$0xff]  ;;  %v535_v18 = vld [vmem:[#allocation2 + $0x1f8] sm:$0xff] }
  0x47   : > { %v1952_v16 = vpack.c.bf16 %v536_v14, %v533_v13  ;;  %v539_v19 = vld [vmem:[#allocation2 + $0x218] sm:$0xff]  ;;  %v542_v20 = vld [vmem:[#allocation2 + $0x230] sm:$0xff]  ;;  %v1954_v21 = vpack.c.bf16 %v535_v18, %v532_v17  ;;  %v541_v24 = vld [vmem:[#allocation2 + $0x228] sm:$0xff]  ;;  %v2588_v6 = vshrl.u32 %v297_v5, 7 }
  0x48   : > { %v1956_v22 = vpack.c.bf16 %v542_v20, %v539_v19  ;;  %v538_v23 = vld [vmem:[#allocation2 + $0x210] sm:$0xff]  ;;  %v545_v25 = vld [vmem:[#allocation2 + $0x248] sm:$0xff]  ;;  %v548_v26 = vld [vmem:[#allocation2 + $0x260] sm:$0xff] }
  0x49   : > { %1931 = vmatpush1.bf16.msra.mxu0 %v1930_v36  ;;  %v1958_v27 = vpack.c.bf16 %v541_v24, %v538_v23  ;;  %v1960_v28 = vpack.c.bf16 %v548_v26, %v545_v25  ;;  %v544_v29 = vld [vmem:[#allocation2 + $0x240] sm:$0xff]  ;;  %v547_v30 = vld [vmem:[#allocation2 + $0x258] sm:$0xff]  ;;  %v554_v32 = vld [vmem:[#allocation2 + $0x290] sm:$0xff]  ;;  %v299_v7 = vsub.s32 0, %v2588_v6 }
  0x4a   : > { %1933 = vmatprep.subr.bf16.mxu0 %v1932_v40  ;;  %v551_v31 = vld [vmem:[#allocation2 + $0x278] sm:$0xff]  ;;  %v1962_v33 = vpack.c.bf16 %v547_v30, %v544_v29  ;;  %v550_v35 = vld [vmem:[#allocation2 + $0x270] sm:$0xff]  ;;  %v553_v36 = vld [vmem:[#allocation2 + $0x288] sm:$0xff] }
  0x4b   : > { %v1964_v34 = vpack.c.bf16 %v554_v32, %v551_v31  ;;  %v557_v37 = vld [vmem:[#allocation2 + $0x2a8] sm:$0xff]  ;;  %v560_v38 = vld [vmem:[#allocation2 + $0x2c0] sm:$0xff]  ;;  %v1966_v39 = vpack.c.bf16 %v553_v36, %v550_v35  ;;  %v559_v42 = vld [vmem:[#allocation2 + $0x2b8] sm:$0xff] }
  0x4c   : > { %v1968_v40 = vpack.c.bf16 %v560_v38, %v557_v37  ;;  %v556_v41 = vld [vmem:[#allocation2 + $0x2a0] sm:$0xff]  ;;  %v581_v43 = vld [vmem:[#allocation2 + $0x368] sm:$0xff]  ;;  %v583_v47 = vld [vmem:[#allocation2 + $0x378] sm:$0xff] }
  0x4d   : > { %1935 = vmatpush1.bf16.msra.mxu0 %v1934_v50  ;;  %v1970_v44 = vpack.c.bf16 %v559_v42, %v556_v41  ;;  %v584_v45 = vld [vmem:[#allocation2 + $0x380] sm:$0xff]  ;;  %v563_v50 = vld [vmem:[#allocation2 + $0x2d8] sm:$0xff]  ;;  %v566_v51 = vld [vmem:[#allocation2 + $0x2f0] sm:$0xff] }
  0x4e   : > { %1937 = vmatprep.subr.bf16.mxu0 %v1936_v54  ;;  %v580_v46 = vld [vmem:[#allocation2 + $0x360] sm:$0xff]  ;;  %v1984_v48 = vpack.c.bf16 %v584_v45, %v581_v43  ;;  %v1972_v52 = vpack.c.bf16 %v566_v51, %v563_v50  ;;  %v562_v53 = vld [vmem:[#allocation2 + $0x2d0] sm:$0xff]  ;;  %v565_v54 = vld [vmem:[#allocation2 + $0x2e8] sm:$0xff] }
  0x4f   : > { %v1986_v49 = vpack.c.bf16 %v583_v47, %v580_v46  ;;  %v587_v55 = vld [vmem:[#allocation2 + $0x398] sm:$0xff]  ;;  %v1974_v56 = vpack.c.bf16 %v565_v54, %v562_v53  ;;  %v590_v57 = vld [vmem:[#allocation2 + $0x3b0] sm:$0xff]  ;;  %v589_v59 = vld [vmem:[#allocation2 + $0x3a8] sm:$0xff] }
  0x50   : > { %1985 = vmatprep.subr.bf16.mxu1 %v1984_v48  ;;  %v586_v58 = vld [vmem:[#allocation2 + $0x390] sm:$0xff]  ;;  %v525_v63 = vld [vmem:[#allocation2 + $0x1a8] sm:$0xff]  ;;  %v2602_v12 = vld [vmem:[%s3023_s5 + $0x8] sm:$0x7] }
  0x51   : > { %1939 = vmatpush1.bf16.msra.mxu0 %v1938_v60  ;;  %1987 = vmatpush1.bf16.msra.mxu1 %v1986_v49  ;;  %v1988_v60 = vpack.c.bf16 %v590_v57, %v587_v55  ;;  %v522_v62 = vld [vmem:[#allocation2 + $0x190] sm:$0xff]  ;;  %v308_v14 = vrot.slane %v2602_v12, %v299_v7  ;;  %v965_v23 = vld [vmem:[#allocation2 + $0x580] sm:$0xff]  ;;  %v968_v24 = vld [vmem:[#allocation2 + $0x598] sm:$0xff] }
  0x52   : > { %1941 = vmatprep.subr.bf16.mxu0 %v1940_v61  ;;  %v1990_v61 = vpack.c.bf16 %v589_v59, %v586_v58  ;;  %v1992_v1 = vpack.c.bf16 %v525_v63, %v522_v62  ;;  %v959_v2 = vld [vmem:[#allocation2 + $0x550] sm:$0xff]  ;;  %v477_v26 = vld [vmem:[#allocation2 + $0x28] sm:$0xff]  ;;  %v528_v29 = vld [vmem:[#allocation2 + $0x1c0] sm:$0xff]  ;;  %v2120_v35 = vpack.c.bf16 %v968_v24, %v965_v23 }
  0x53   : > { %1989 = vmatprep.subr.bf16.mxu1 %v1988_v60  ;;  %v2594_v8 = vld [vmem:[%s3023_s5] sm:$0x77]  ;;  %v323_v19 = vrot.slane %v308_v14, %v299_v7  ;;  %v531_v30 = vld [vmem:[#allocation2 + $0x1d8] sm:$0xff]  ;;  %v917_v36 = vld [vmem:[#allocation2 + $0x400] sm:$0xff] }
  0x54   : > { %v911_v20 = vld [vmem:[#allocation2 + $0x3d0] sm:$0xff]  ;;  %v920_v37 = vld [vmem:[#allocation2 + $0x418] sm:$0xff]  ;;  %v1996_v42 = vpack.c.bf16 %v531_v30, %v528_v29  ;;  %v480_v43 = vld [vmem:[#allocation2 + $0x40] sm:$0xff] }
  0x55   : > { %1943 = vmatpush1.bf16.msra.mxu0 %v1942_v3  ;;  %1991 = vmatpush1.bf16.msra.mxu1 %v1990_v61  ;;  %v962_v3 = vld [vmem:[#allocation2 + $0x568] sm:$0xff]  ;;  %v474_v25 = vld [vmem:[#allocation2 + $0x10] sm:$0xff]  ;;  %v2122_v47 = vpack.c.bf16 %v920_v37, %v917_v36  ;;  %v980_v53 = vld [vmem:[#allocation2 + $0x5f8] sm:$0xff] }
  0x56   : > { %1945 = vmatprep.subr.bf16.mxu0 %v1944_v4  ;;  %1993 = vmatprep.subr.bf16.mxu1 %v1992_v1  ;;  %v2116_v4 = vpack.c.bf16 %v962_v3, %v959_v2  ;;  %v1994_v38 = vpack.c.bf16 %v477_v26, %v474_v25  ;;  %v534_v45 = vld [vmem:[#allocation2 + $0x1f0] sm:$0xff]  ;;  %v537_v46 = vld [vmem:[#allocation2 + $0x208] sm:$0xff]  ;;  %v540_v57 = vld [vmem:[#allocation2 + $0x220] sm:$0xff] }
  0x57   : > { %v923_v49 = vld [vmem:[#allocation2 + $0x430] sm:$0xff]  ;;  %v926_v50 = vld [vmem:[#allocation2 + $0x448] sm:$0xff]  ;;  %v2000_v54 = vpack.c.bf16 %v537_v46, %v534_v45  ;;  %v543_v58 = vld [vmem:[#allocation2 + $0x238] sm:$0xff] }
  0x58   : > { %v486_v55 = vld [vmem:[#allocation2 + $0x70] sm:$0xff]  ;;  %v2126_v59 = vpack.c.bf16 %v926_v50, %v923_v49  ;;  %v929_v61 = vld [vmem:[#allocation2 + $0x460] sm:$0xff]  ;;  %v932_v62 = vld [vmem:[#allocation2 + $0x478] sm:$0xff]  ;;  %v2004_v3 = vpack.c.bf16 %v543_v58, %v540_v57 }
  0x59   : > { %1947 = vmatpush1.bf16.msra.mxu0 %v1946_v9  ;;  %v303_v9 = vsub.s32 4, %v2588_v6  ;;  %v983_v1 = vld [vmem:[#allocation2 + $0x610] sm:$0xff]  ;;  %v986_v2 = vld [vmem:[#allocation2 + $0x628] sm:$0xff]  ;;  %v495_v5 = vld [vmem:[#allocation2 + $0xb8] sm:$0xff] }
  0x5a   : > { %1949 = vmatprep.subr.bf16.mxu0 %v1948_v10  ;;  %v300_v10 = vrot.slane %v2594_v8, %v299_v7  ;;  %v938_v14 = vld [vmem:[#allocation2 + $0x4a8] sm:$0xff]  ;;  %v555_v23 = vld [vmem:[#allocation2 + $0x298] sm:$0xff]  ;;  %v941_v26 = vld [vmem:[#allocation2 + $0x4c0] sm:$0xff] }
  0x5b   : > { %v304_v11 = vrot.slane %v2594_v8, %v303_v9  ;;  %v549_v9 = vld [vmem:[#allocation2 + $0x268] sm:$0xff]  ;;  %v504_v30 = vld [vmem:[#allocation2 + $0x100] sm:$0xff]  ;;  %v570_v49 = vld [vmem:[#allocation2 + $0x310] sm:$0xff] }
  0x5c   : > { %v315_v13 = vrot.slane %v300_v10, %v299_v7  ;;  %v2130_v10 = vpack.c.bf16 %v932_v62, %v929_v61  ;;  %v516_v46 = vld [vmem:[#allocation2 + $0x160] sm:$0xff]  ;;  %v573_v50 = vld [vmem:[#allocation2 + $0x328] sm:$0xff] }
  0x5d   : > { %1951 = vmatpush1.bf16.msra.mxu0 %v1950_v15  ;;  %v319_v15 = vrot.slane %v304_v11, %v299_v7  ;;  %v546_v7 = vld [vmem:[#allocation2 + $0x250] sm:$0xff]  ;;  %v2132_v11 = vpack.c.bf16 %v986_v2, %v983_v1  ;;  %v585_v57 = vld [vmem:[#allocation2 + $0x388] sm:$0xff]  ;;  %v913_v62 = vld [vmem:[#allocation2 + $0x3e0] sm:$0xff] }
  0x5e   : > { %1953 = vmatprep.subr.bf16.mxu0 %v1952_v16  ;;  %v910_v61 = vld [vmem:[#allocation2 + $0x3c8] sm:$0xff]  ;;  %v912_v1 = vld [vmem:[#allocation2 + $0x3d8] sm:$0xff] }
  0x5f   : > { %v916_v2 = vld [vmem:[#allocation2 + $0x3f8] sm:$0xff] }
  0x61   : > { %1955 = vmatpush1.bf16.msra.mxu0 %v1954_v21  ;;  %v914_v21 = vld [vmem:[#allocation2 + $0x3e8] sm:$0xff] }
  0x62   : > { %1957 = vmatprep.subr.bf16.mxu0 %v1956_v22  ;;  %v2118_v31 = vpack.c.bf16 %v914_v21, %v911_v20  ;;  %v498_v20 = vld [vmem:[#allocation2 + $0xd0] sm:$0xff]  ;;  %v501_v21 = vld [vmem:[#allocation2 + $0xe8] sm:$0xff] }
  0x65   : > { %1959 = vmatpush1.bf16.msra.mxu0 %v1958_v27 }
  0x66   : > { %1961 = vmatprep.subr.bf16.mxu0 %v1960_v28 }
  0x69   : > { %1963 = vmatpush1.bf16.msra.mxu0 %v1962_v33 }
  0x6a   : > { %1965 = vmatprep.subr.bf16.mxu0 %v1964_v34 }
  0x6d   : > { %1967 = vmatpush1.bf16.msra.mxu0 %v1966_v39  ;;  %v971_v39 = vld [vmem:[#allocation2 + $0x5b0] sm:$0xff] }
  0x6e   : > { %1969 = vmatprep.subr.bf16.mxu0 %v1968_v40  ;;  %v974_v40 = vld [vmem:[#allocation2 + $0x5c8] sm:$0xff] }
  0x6f   : > { %v2124_v48 = vpack.c.bf16 %v974_v40, %v971_v39  ;;  %v510_v39 = vld [vmem:[#allocation2 + $0x130] sm:$0xff]  ;;  %v513_v40 = vld [vmem:[#allocation2 + $0x148] sm:$0xff] }
  0x71   : > { %1971 = vmatpush1.bf16.msra.mxu0 %v1970_v44  ;;  %v483_v44 = vld [vmem:[#allocation2 + $0x58] sm:$0xff] }
  0x72   : > { %1973 = vmatprep.subr.bf16.mxu0 %v1972_v52  ;;  %v1998_v51 = vpack.c.bf16 %v483_v44, %v480_v43  ;;  %v977_v52 = vld [vmem:[#allocation2 + $0x5e0] sm:$0xff]  ;;  %v567_v43 = vld [vmem:[#allocation2 + $0x2f8] sm:$0xff]  ;;  %v2018_v44 = vpack.c.bf16 %v513_v40, %v510_v39 }
  0x73   : > { %v2128_v60 = vpack.c.bf16 %v980_v53, %v977_v52  ;;  %v2442_v52 = vmov 0.0|0.0   ;;  %v576_v53 = vld [vmem:[#allocation2 + $0x340] sm:$0xff] }
  0x74   : > { %v945_v40 = vld [vmem:[#allocation2 + $0x4e0] sm:$0xff] }
  0x75   : > { %1975 = vmatpush1.bf16.msra.mxu0 %v1974_v56  ;;  %v489_v56 = vld [vmem:[#allocation2 + $0x88] sm:$0xff] }
  0x76   : > { %2117 = vmatprep.subr.bf16.mxu0 %v2116_v4  ;;  %v2002_v63 = vpack.c.bf16 %v489_v56, %v486_v55  ;;  %v492_v4 = vld [vmem:[#allocation2 + $0xa0] sm:$0xff]  ;;  %v582_v56 = vld [vmem:[#allocation2 + $0x370] sm:$0xff] }
  0x77   : > { %v2031_v58 = vpack.c.bf16 %v585_v57, %v582_v56  ;;  %v964_v56 = vld [vmem:[#allocation2 + $0x578] sm:$0xff]  ;;  %v967_v57 = vld [vmem:[#allocation2 + $0x590] sm:$0xff] }
 0x10e   : > { %v394_v16 = vpop.f32.mrb[0].mxu1 }
 0x10f   : > { %v2605_v17 = vadd.f32 %v394_v16, %v315_v13  ;;  %v396_v18 = vpop.f32.mrb[1].mxu1  ;;  %v935_v13 = vld [vmem:[#allocation2 + $0x490] sm:$0xff]  ;;  %v989_v16 = vld [vmem:[#allocation2 + $0x640] sm:$0xff] }
 0x110   : > { %v397_v22 = vadd.f32 %v396_v18, %v319_v15  ;;  %v2006_v15 = vpack.c.bf16 %v495_v5, %v492_v4  ;;  %v992_v18 = vld [vmem:[#allocation2 + $0x658] sm:$0xff]  ;;  %v2134_v24 = vpack.c.bf16 %v938_v14, %v935_v13 }
 0x111   : > { %v469_v32 = vmax.f32 %v2605_v17, 0.0  ;;  %v2136_v25 = vpack.c.bf16 %v992_v18, %v989_v16  ;;  %v924_v16 = vld [vmem:[#allocation2 + $0x438] sm:$0xff] }
 0x112   : > { %v470_v27 = vmax.f32 %v397_v22, 0.0  ;;  %v465_v28 = vpop.f32.mrb[2].mxu1  ;;  %v552_v22 = vld [vmem:[#allocation2 + $0x280] sm:$0xff]  ;;  %v928_v18 = vld [vmem:[#allocation2 + $0x458] sm:$0xff] }
 0x113   : > { %v2608_v33 = vadd.f32 %v465_v28, %v323_v19  ;;  %v1873_v34 = vpop.f32.mrb[3].mxu1  ;;  %v2008_v19 = vpack.c.bf16 %v549_v9, %v546_v7  ;;  %v2010_v28 = vpack.c.bf16 %v501_v21, %v498_v20  ;;  %v2012_v29 = vpack.c.bf16 %v555_v23, %v552_v22  ;;  %v915_v7 = vld [vmem:[#allocation2 + $0x3f0] sm:$0xff]  ;;  %v918_v9 = vld [vmem:[#allocation2 + $0x408] sm:$0xff] }
 0x114   : > { %687 = vmatprep.mubr.f32.mxu0 %v470_v27  ;;  %v558_v34 = vld [vmem:[#allocation2 + $0x2b0] sm:$0xff]  ;;  %v2042_v13 = vpack.c.bf16 %v918_v9, %v915_v7  ;;  %v930_v23 = vld [vmem:[#allocation2 + $0x468] sm:$0xff] }
 0x115   : > { %v471_v41 = vmax.f32 %v2608_v33, 0.0  ;;  %688 = vmatmul.mubr.f32.vlgmr.msra.gmra.mrb[0].mxu0 %v469_v32  ;;  %v927_v22 = vld [vmem:[#allocation2 + $0x450] sm:$0xff]  ;;  %v950_v9 = vld [vmem:[#allocation2 + $0x508] sm:$0xff] }
 0x116   : > { %2119 = vmatpush3.bf16.msra.mxu0 %v2118_v31  ;;  %v507_v31 = vld [vmem:[#allocation2 + $0x118] sm:$0xff]  ;;  %v2050_v33 = vpack.c.bf16 %v930_v23, %v927_v22  ;;  %v947_v7 = vld [vmem:[#allocation2 + $0x4f0] sm:$0xff]  ;;  %v953_v22 = vld [vmem:[#allocation2 + $0x520] sm:$0xff] }
 0x117   : > { %1768 = vmatmul.mubr.msk.f32.vlgmr.msra.gmra.mrb[4].mxu1 %vm619_vm2, %v471_v41  ;;  %2121 = vmatprep.subr.bf16.mxu0 %v2120_v35  ;;  %v561_v35 = vld [vmem:[#allocation2 + $0x2c8] sm:$0xff]  ;;  %v2014_v37 = vpack.c.bf16 %v507_v31, %v504_v30  ;;  %v956_v23 = vld [vmem:[#allocation2 + $0x538] sm:$0xff] }
 0x118   : > { %1995 = vmatpush3.bf16.msra.mxu1 %v1994_v38  ;;  %829 = vmatprep.mubr.f32.mxu1 %v470_v27  ;;  %v944_v27 = vld [vmem:[#allocation2 + $0x4d8] sm:$0xff]  ;;  %v2016_v38 = vpack.c.bf16 %v561_v35, %v558_v34  ;;  %v939_v34 = vld [vmem:[#allocation2 + $0x4b0] sm:$0xff]  ;;  %v942_v35 = vld [vmem:[#allocation2 + $0x4c8] sm:$0xff] }
 0x119   : > { %1997 = vmatprep.subr.bf16.mxu1 %v1996_v42  ;;  %v2138_v36 = vpack.c.bf16 %v944_v27, %v941_v26  ;;  %v564_v42 = vld [vmem:[#allocation2 + $0x2e0] sm:$0xff]  ;;  %v936_v27 = vld [vmem:[#allocation2 + $0x498] sm:$0xff] }
 0x11a   : > { %2123 = vmatpush3.bf16.msra.mxu0 %v2122_v47  ;;  %v2020_v45 = vpack.c.bf16 %v567_v43, %v564_v42  ;;  %v519_v47 = vld [vmem:[#allocation2 + $0x178] sm:$0xff]  ;;  %v933_v26 = vld [vmem:[#allocation2 + $0x480] sm:$0xff] }
 0x11b   : > { %2125 = vmatprep.subr.bf16.mxu0 %v2124_v48  ;;  %v2022_v48 = vpack.c.bf16 %v519_v47, %v516_v46  ;;  %v2054_v30 = vpack.c.bf16 %v936_v27, %v933_v26  ;;  %v948_v42 = vld [vmem:[#allocation2 + $0x4f8] sm:$0xff]  ;;  %v951_v47 = vld [vmem:[#allocation2 + $0x510] sm:$0xff]  ;;  %v981_v27 = vld [vmem:[#allocation2 + $0x600] sm:$0xff] }
 0x11c   : > { %1999 = vmatpush3.bf16.msra.mxu1 %v1998_v51  ;;  %v2025_v51 = vpack.c.bf16 %v573_v50, %v570_v49  ;;  %v952_v43 = vld [vmem:[#allocation2 + $0x518] sm:$0xff]  ;;  %v958_v49 = vld [vmem:[#allocation2 + $0x548] sm:$0xff]  ;;  %v961_v50 = vld [vmem:[#allocation2 + $0x560] sm:$0xff] }
 0x11d   : > { %2001 = vmatprep.subr.bf16.mxu1 %v2000_v54  ;;  %v579_v54 = vld [vmem:[#allocation2 + $0x358] sm:$0xff] }
 0x11e   : > { %2127 = vmatpush3.bf16.msra.mxu0 %v2126_v59  ;;  %v2028_v55 = vpack.c.bf16 %v579_v54, %v576_v53  ;;  %v588_v59 = vld [vmem:[#allocation2 + $0x3a0] sm:$0xff]  ;;  %v2068_v53 = vpack.c.bf16 %v961_v50, %v958_v49  ;;  %v1002_v49 = vld [vmem:[#allocation2 + $0x6a8] sm:$0xff] }
 0x11f   : > { %2129 = vmatprep.subr.bf16.mxu0 %v2128_v60  ;;  %v591_v60 = vld [vmem:[#allocation2 + $0x3b8] sm:$0xff]  ;;  %v957_v54 = vld [vmem:[#allocation2 + $0x540] sm:$0xff] }
 0x120   : > { %2003 = vmatpush3.bf16.msra.mxu1 %v2002_v63  ;;  %v2034_v17 = vpack.c.bf16 %v591_v60, %v588_v59  ;;  %v909_v63 = vld [vmem:[#allocation2 + $0x3c0] sm:$0xff]  ;;  %v2072_v59 = vpack.c.bf16 %v967_v57, %v964_v56  ;;  %v963_v60 = vld [vmem:[#allocation2 + $0x570] sm:$0xff]  ;;  %v598_v56 = vsub.s32 5, %v2588_v6 }
 0x121   : > { %2005 = vmatprep.subr.bf16.mxu1 %v2004_v3  ;;  %v919_v3 = vld [vmem:[#allocation2 + $0x410] sm:$0xff]  ;;  %v2038_v4 = vpack.c.bf16 %v912_v1, %v909_v63  ;;  %v969_v1 = vld [vmem:[#allocation2 + $0x5a0] sm:$0xff] }
 0x122   : > { %2131 = vmatpush3.bf16.msra.mxu0 %v2130_v10  ;;  %v2040_v5 = vpack.c.bf16 %v919_v3, %v916_v2  ;;  %v922_v10 = vld [vmem:[#allocation2 + $0x428] sm:$0xff] }
 0x123   : > { %2133 = vmatprep.subr.bf16.mxu0 %v2132_v11  ;;  %v925_v11 = vld [vmem:[#allocation2 + $0x440] sm:$0xff]  ;;  %v998_v2 = vld [vmem:[#allocation2 + $0x688] sm:$0xff] }
 0x124   : > { %2007 = vmatpush3.bf16.msra.mxu1 %v2006_v15  ;;  %v2044_v14 = vpack.c.bf16 %v925_v11, %v922_v10  ;;  %v921_v15 = vld [vmem:[#allocation2 + $0x420] sm:$0xff]  ;;  %v976_v10 = vld [vmem:[#allocation2 + $0x5d8] sm:$0xff]  ;;  %v979_v11 = vld [vmem:[#allocation2 + $0x5f0] sm:$0xff] }
 0x125   : > { %2009 = vmatprep.subr.bf16.mxu1 %v2008_v19  ;;  %v931_v19 = vld [vmem:[#allocation2 + $0x470] sm:$0xff]  ;;  %v2046_v20 = vpack.c.bf16 %v924_v16, %v921_v15 }
 0x126   : > { %2135 = vmatpush3.bf16.msra.mxu0 %v2134_v24  ;;  %v2048_v21 = vpack.c.bf16 %v931_v19, %v928_v18  ;;  %v934_v24 = vld [vmem:[#allocation2 + $0x488] sm:$0xff]  ;;  %v975_v16 = vld [vmem:[#allocation2 + $0x5d0] sm:$0xff]  ;;  %v1004_v18 = vld [vmem:[#allocation2 + $0x6b8] sm:$0xff]  ;;  %v2080_v19 = vpack.c.bf16 %v979_v11, %v976_v10 }
 0x127   : > { %2137 = vmatprep.subr.bf16.mxu0 %v2136_v25  ;;  %v937_v25 = vld [vmem:[#allocation2 + $0x4a0] sm:$0xff]  ;;  %v1012_v10 = vld [vmem:[#allocation2 + $0x6f8] sm:$0xff]  ;;  %v1015_v11 = vld [vmem:[#allocation2 + $0x710] sm:$0xff] }
 0x128   : > { %2011 = vmatpush3.bf16.msra.mxu1 %v2010_v28  ;;  %v940_v28 = vld [vmem:[#allocation2 + $0x4b8] sm:$0xff] }
 0x129   : > { %2013 = vmatprep.subr.bf16.mxu1 %v2012_v29  ;;  %v943_v29 = vld [vmem:[#allocation2 + $0x4d0] sm:$0xff] }
 0x12a   : > { %2139 = vmatpush3.bf16.msra.mxu0 %v2138_v36  ;;  %v2056_v31 = vpack.c.bf16 %v943_v29, %v940_v28  ;;  %v946_v36 = vld [vmem:[#allocation2 + $0x4e8] sm:$0xff]  ;;  %v984_v28 = vld [vmem:[#allocation2 + $0x618] sm:$0xff] }
 0x12b   : > { %v988_v29 = vld [vmem:[#allocation2 + $0x638] sm:$0xff] }
 0x12c   : > { %2015 = vmatpush3.bf16.msra.mxu1 %v2014_v37  ;;  %v949_v37 = vld [vmem:[#allocation2 + $0x500] sm:$0xff] }
 0x12d   : > { %2017 = vmatprep.subr.bf16.mxu1 %v2016_v38  ;;  %v2058_v38 = vpack.c.bf16 %v942_v35, %v939_v34  ;;  %v2060_v39 = vpack.c.bf16 %v949_v37, %v946_v36  ;;  %v987_v35 = vld [vmem:[#allocation2 + $0x630] sm:$0xff]  ;;  %v990_v36 = vld [vmem:[#allocation2 + $0x648] sm:$0xff] }
 0x12e   : > { %v994_v37 = vld [vmem:[#allocation2 + $0x668] sm:$0xff] }
 0x130   : > { %2019 = vmatpush3.bf16.msra.mxu1 %v2018_v44  ;;  %v955_v44 = vld [vmem:[#allocation2 + $0x530] sm:$0xff] }
 0x131   : > { %2021 = vmatprep.subr.bf16.mxu1 %v2020_v45  ;;  %v2062_v45 = vpack.c.bf16 %v948_v42, %v945_v40  ;;  %v2064_v46 = vpack.c.bf16 %v955_v44, %v952_v43  ;;  %v993_v42 = vld [vmem:[#allocation2 + $0x660] sm:$0xff]  ;;  %v996_v43 = vld [vmem:[#allocation2 + $0x678] sm:$0xff] }
 0x132   : > { %v1000_v44 = vld [vmem:[#allocation2 + $0x698] sm:$0xff] }
 0x134   : > { %2023 = vmatpush3.bf16.msra.mxu1 %v2022_v48  ;;  %v954_v48 = vld [vmem:[#allocation2 + $0x528] sm:$0xff] }
 0x135   : > { %2024 = vmatprep.subr.bf16.mxu1 %v2442_v52 }
 0x137   : > { %830 = vmatmul.mubr.f32.vlgmr.msra.gmra.mrb[6].mxu1 %v469_v32  ;;  %v2036_v32 = vpack.c.bf16 %v913_v62, %v910_v61  ;;  %v966_v61 = vld [vmem:[#allocation2 + $0x588] sm:$0xff] }
 0x138   : > { %2026 = vmatpush3.bf16.msra.mxu1 %v2025_v51  ;;  %1890 = vmatprep.mubr.msk.f32.mxu1 %vm2441_vm1, %v2440_v0  ;;  %v2066_v51 = vpack.c.bf16 %v954_v48, %v951_v47  ;;  %v970_v62 = vld [vmem:[#allocation2 + $0x5a8] sm:$0xff]  ;;  %v2074_v63 = vpack.c.bf16 %v966_v61, %v963_v60  ;;  %v999_v48 = vld [vmem:[#allocation2 + $0x690] sm:$0xff] }
 0x139   : > { %2027 = vmatprep.subr.bf16.mxu1 %v2442_v52  ;;  %v2098_v50 = vpack.c.bf16 %v1002_v49, %v999_v48 }
 0x13c   : > { %2029 = vmatpush3.bf16.msra.mxu1 %v2028_v55  ;;  %v960_v55 = vld [vmem:[#allocation2 + $0x558] sm:$0xff] }
 0x13d   : > { %2030 = vmatprep.subr.bf16.mxu1 %v2442_v52 }
 0x140   : > { %2032 = vmatpush3.bf16.msra.mxu1 %v2031_v58  ;;  %v2070_v58 = vpack.c.bf16 %v960_v55, %v957_v54  ;;  %v2629_v55 = vsub.s32 1, %v2588_v6 }
 0x141   : > { %2033 = vmatprep.subr.bf16.mxu1 %v2442_v52 }
 0x142   : > { %v595_v57 = vrot.slane %v2594_v8, %v2629_v55  ;;  %v603_v49 = vrot.slane %v2602_v12, %v2629_v55  ;;  %v1351_v12 = vld [vmem:[%s3021_s3 + $0x38] sm:$0xff] }
 0x144   : > { %2035 = vmatpush3.bf16.msra.mxu1 %v2034_v17  ;;  %v973_v17 = vld [vmem:[#allocation2 + $0x5c0] sm:$0xff] }
 0x145   : > { %2037 = vmatprep.subr.bf16.mxu1 %v2036_v32  ;;  %v995_v32 = vld [vmem:[#allocation2 + $0x670] sm:$0xff]  ;;  %v2076_v3 = vpack.c.bf16 %v973_v17, %v970_v62 }
 0x147   : > { %1891 = vmatmul.mubr.msk.f32.vlgmr.msra.gmra.mrb[8].mxu1 %vm619_vm2, %v471_v41  ;;  %v2052_v41 = vpack.c.bf16 %v937_v25, %v934_v24  ;;  %v982_v24 = vld [vmem:[#allocation2 + $0x608] sm:$0xff]  ;;  %v985_v25 = vld [vmem:[#allocation2 + $0x620] sm:$0xff] }
 0x148   : > { %2039 = vmatpush1.bf16.msra.mxu1 %v2038_v4  ;;  %v972_v4 = vld [vmem:[#allocation2 + $0x5b8] sm:$0xff]  ;;  %v2084_v26 = vpack.c.bf16 %v985_v25, %v982_v24 }
 0x149   : > { %2041 = vmatprep.subr.bf16.mxu1 %v2040_v5  ;;  %v2140_v5 = vpack.c.bf16 %v998_v2, %v995_v32  ;;  %v2078_v15 = vpack.c.bf16 %v972_v4, %v969_v1  ;;  %v1005_v1 = vld [vmem:[#allocation2 + $0x6c0] sm:$0xff]  ;;  %v1008_v4 = vld [vmem:[#allocation2 + $0x6d8] sm:$0xff] }
 0x14b   : > { %2141 = vmatprep.subr.bf16.mxu0 %v2140_v5  ;;  %v1007_v5 = vld [vmem:[#allocation2 + $0x6d0] sm:$0xff] }
 0x14c   : > { %2043 = vmatpush1.bf16.msra.mxu1 %v2042_v13  ;;  %v2142_v13 = vpack.c.bf16 %v950_v9, %v947_v7  ;;  %v1010_v7 = vld [vmem:[#allocation2 + $0x6e8] sm:$0xff] }
 0x14d   : > { %2045 = vmatprep.subr.bf16.mxu1 %v2044_v14  ;;  %v1001_v14 = vld [vmem:[#allocation2 + $0x6a0] sm:$0xff] }
 0x14e   : > { %2143 = vmatpush3.bf16.msra.mxu0 %v2142_v13 }
 0x150   : > { %2047 = vmatpush1.bf16.msra.mxu1 %v2046_v20  ;;  %v978_v20 = vld [vmem:[#allocation2 + $0x5e8] sm:$0xff] }
 0x151   : > { %2049 = vmatprep.subr.bf16.mxu1 %v2048_v21  ;;  %v2144_v21 = vpack.c.bf16 %v1004_v18, %v1001_v14  ;;  %v2149_v14 = vpack.c.bf16 %v1010_v7, %v1007_v5  ;;  %v2104_v18 = vpack.c.bf16 %v1015_v11, %v1012_v10  ;;  %v1357_v5 = vld [vmem:[%s3021_s3 + $0x68] sm:$0xff]  ;;  %v1359_v7 = vld [vmem:[%s3021_s3 + $0x78] sm:$0xff]  ;;  %v1356_v11 = vld [vmem:[%s3021_s3 + $0x60] sm:$0xff] }
 0x152   : > { %v2172_v10 = vpack.c.bf16 %v1359_v7, %v1357_v5  ;;  %v1399_v5 = vld [vmem:[%s3021_s3 + $0x1b8] sm:$0xff] }
 0x153   : > { %2145 = vmatprep.subr.bf16.mxu0 %v2144_v21  ;;  %v1016_v21 = vld [vmem:[#allocation2 + $0x718] sm:$0xff] }
 0x154   : > { %2051 = vmatpush1.bf16.msra.mxu1 %v2050_v33  ;;  %v2146_v33 = vpack.c.bf16 %v956_v23, %v953_v22  ;;  %v1018_v22 = vld [vmem:[#allocation2 + $0x728] sm:$0xff]  ;;  %v1021_v23 = vld [vmem:[#allocation2 + $0x740] sm:$0xff] }
 0x155   : > { %2053 = vmatprep.subr.bf16.mxu1 %v2052_v41  ;;  %v2082_v41 = vpack.c.bf16 %v978_v20, %v975_v16  ;;  %v1013_v20 = vld [vmem:[#allocation2 + $0x700] sm:$0xff] }
 0x156   : > { %2147 = vmatpush3.bf16.msra.mxu0 %v2146_v33  ;;  %v2152_v25 = vpack.c.bf16 %v1016_v21, %v1013_v20  ;;  %v1017_v33 = vld [vmem:[#allocation2 + $0x720] sm:$0xff]  ;;  %v1365_v20 = vld [vmem:[%s3021_s3 + $0xa8] sm:$0xff] }
 0x157   : > { %2148 = vmatprep.subr.bf16.mxu0 %v2442_v52 }
 0x158   : > { %2055 = vmatpush1.bf16.msra.mxu1 %v2054_v30  ;;  %v991_v30 = vld [vmem:[#allocation2 + $0x650] sm:$0xff] }
 0x159   : > { %2057 = vmatprep.subr.bf16.mxu1 %v2056_v31  ;;  %v2086_v31 = vpack.c.bf16 %v984_v28, %v981_v27  ;;  %v2088_v34 = vpack.c.bf16 %v991_v30, %v988_v29  ;;  %v1019_v27 = vld [vmem:[#allocation2 + $0x730] sm:$0xff]  ;;  %v1022_v28 = vld [vmem:[#allocation2 + $0x748] sm:$0xff]  ;;  %v1024_v29 = vld [vmem:[#allocation2 + $0x758] sm:$0xff] }
 0x15a   : > { %v1027_v30 = vld [vmem:[#allocation2 + $0x770] sm:$0xff] }
 0x15c   : > { %2059 = vmatpush1.bf16.msra.mxu1 %v2058_v38  ;;  %v997_v38 = vld [vmem:[#allocation2 + $0x680] sm:$0xff] }
 0x15d   : > { %2061 = vmatprep.subr.bf16.mxu1 %v2060_v39  ;;  %v2090_v39 = vpack.c.bf16 %v990_v36, %v987_v35  ;;  %v2092_v40 = vpack.c.bf16 %v997_v38, %v994_v37  ;;  %v1023_v35 = vld [vmem:[#allocation2 + $0x750] sm:$0xff]  ;;  %v2112_v36 = vpack.c.bf16 %v1027_v30, %v1024_v29  ;;  %v1026_v37 = vld [vmem:[#allocation2 + $0x768] sm:$0xff]  ;;  %v1025_v38 = vld [vmem:[#allocation2 + $0x760] sm:$0xff] }
 0x15e   : > { %v1370_v29 = vld [vmem:[%s3021_s3 + $0xd0] sm:$0xff]  ;;  %v1373_v30 = vld [vmem:[%s3021_s3 + $0xe8] sm:$0xff] }
 0x160   : > { %2063 = vmatpush1.bf16.msra.mxu1 %v2062_v45  ;;  %v1003_v45 = vld [vmem:[#allocation2 + $0x6b0] sm:$0xff] }
 0x161   : > { %2065 = vmatprep.subr.bf16.mxu1 %v2064_v46  ;;  %v2094_v46 = vpack.c.bf16 %v996_v43, %v993_v42  ;;  %v2096_v47 = vpack.c.bf16 %v1003_v45, %v1000_v44  ;;  %v1347_v42 = vld [vmem:[%s3021_s3 + $0x18] sm:$0xff]  ;;  %v2114_v43 = vpack.c.bf16 %v1026_v37, %v1023_v35  ;;  %v1374_v37 = vld [vmem:[%s3021_s3 + $0xf0] sm:$0xff] }
 0x164   : > { %2067 = vmatpush1.bf16.msra.mxu1 %v2066_v51  ;;  %v1006_v51 = vld [vmem:[#allocation2 + $0x6c8] sm:$0xff] }
 0x165   : > { %2069 = vmatprep.subr.bf16.mxu1 %v2068_v53  ;;  %v1009_v53 = vld [vmem:[#allocation2 + $0x6e0] sm:$0xff] }
 0x166   : > { %v2100_v54 = vpack.c.bf16 %v1009_v53, %v1006_v51  ;;  %v1344_v53 = vld [vmem:[%s3021_s3] sm:$0xff] }
 0x168   : > { %2071 = vmatpush1.bf16.msra.mxu1 %v2070_v58  ;;  %v599_v58 = vrot.slane %v2594_v8, %v598_v56  ;;  %v2102_v8 = vpack.c.bf16 %v1008_v4, %v1005_v1  ;;  %v1354_v4 = vld [vmem:[%s3021_s3 + $0x50] sm:$0xff] }
 0x169   : > { %2073 = vmatprep.subr.bf16.mxu1 %v2072_v59  ;;  %v610_v59 = vrot.slane %v595_v57, %v2629_v55  ;;  %v1349_v57 = vld [vmem:[%s3021_s3 + $0x28] sm:$0xff] }
 0x16a   : > { %v614_v60 = vrot.slane %v599_v58, %v2629_v55 }
 0x16c   : > { %2075 = vmatpush1.bf16.msra.mxu1 %v2074_v63 }
 0x16d   : > { %2077 = vmatprep.subr.bf16.mxu1 %v2076_v3 }
 0x170   : > { %2079 = vmatpush1.bf16.msra.mxu1 %v2078_v15  ;;  %v1011_v15 = vld [vmem:[#allocation2 + $0x6f0] sm:$0xff] }
 0x171   : > { %2081 = vmatprep.subr.bf16.mxu1 %v2080_v19  ;;  %v1014_v19 = vld [vmem:[#allocation2 + $0x708] sm:$0xff] }
 0x172   : > { %v2106_v24 = vpack.c.bf16 %v1014_v19, %v1011_v15  ;;  %v1363_v15 = vld [vmem:[%s3021_s3 + $0x98] sm:$0xff]  ;;  %v1362_v19 = vld [vmem:[%s3021_s3 + $0x90] sm:$0xff] }
 0x174   : > { %2083 = vmatpush1.bf16.msra.mxu1 %v2082_v41  ;;  %v2108_v41 = vpack.c.bf16 %v1021_v23, %v1018_v22  ;;  %v1367_v22 = vld [vmem:[%s3021_s3 + $0xb8] sm:$0xff]  ;;  %v1364_v23 = vld [vmem:[%s3021_s3 + $0xa0] sm:$0xff] }
 0x175   : > { %2085 = vmatprep.subr.bf16.mxu1 %v2084_v26  ;;  %v1020_v26 = vld [vmem:[#allocation2 + $0x738] sm:$0xff] }
 0x178   : > { %2087 = vmatpush1.bf16.msra.mxu1 %v2086_v31  ;;  %v2110_v31 = vpack.c.bf16 %v1020_v26, %v1017_v33  ;;  %v1369_v33 = vld [vmem:[%s3021_s3 + $0xc8] sm:$0xff] }
 0x179   : > { %2089 = vmatprep.subr.bf16.mxu1 %v2088_v34  ;;  %v2155_v34 = vpack.c.bf16 %v1022_v28, %v1019_v27  ;;  %v1368_v28 = vld [vmem:[%s3021_s3 + $0xc0] sm:$0xff] }
 0x17c   : > { %2091 = vmatpush1.bf16.msra.mxu1 %v2090_v39  ;;  %v1028_v39 = vld [vmem:[#allocation2 + $0x778] sm:$0xff] }
 0x17d   : > { %2093 = vmatprep.subr.bf16.mxu1 %v2092_v40  ;;  %v1345_v40 = vld [vmem:[%s3021_s3 + $0x8] sm:$0xff]  ;;  %v2158_v44 = vpack.c.bf16 %v1028_v39, %v1025_v38  ;;  %v1379_v39 = vld [vmem:[%s3021_s3 + $0x118] sm:$0xff] }
 0x17e   : > { %v2160_v45 = vpack.c.bf16 %v1347_v42, %v1345_v40  ;;  %v1377_v38 = vld [vmem:[%s3021_s3 + $0x108] sm:$0xff] }
 0x17f   : > { %v2192_v42 = vpack.c.bf16 %v1379_v39, %v1377_v38  ;;  %v1577_v38 = vld [vmem:[%s3022_s4 + $0x30] sm:$0xff]  ;;  %v1578_v39 = vld [vmem:[%s3022_s4 + $0x38] sm:$0xff] }
 0x180   : > { %2095 = vmatpush1.bf16.msra.mxu1 %v2094_v46 }
 0x181   : > { %2097 = vmatprep.subr.bf16.mxu1 %v2096_v47 }
 0x184   : > { %2099 = vmatpush1.bf16.msra.mxu1 %v2098_v50  ;;  %v618_v50 = vrot.slane %v603_v49, %v2629_v55  ;;  %v1380_v49 = vld [vmem:[%s3021_s3 + $0x120] sm:$0xff] }
 0x185   : > { %2101 = vmatprep.subr.bf16.mxu1 %v2100_v54  ;;  %v1346_v54 = vld [vmem:[%s3021_s3 + $0x10] sm:$0xff] }
 0x1e8   : > { %v689_v61 = vpop.f32.mrb[0].mxu0 }
 0x1e9   : > { %v690_v62 = vadd.f32 %v689_v61, %v610_v59  ;;  %v691_v17 = vpop.f32.mrb[1].mxu0  ;;  %v2162_v59 = vpack.c.bf16 %v1346_v54, %v1344_v53  ;;  %v2164_v61 = vpack.c.bf16 %v1351_v12, %v1349_v57  ;;  %v1387_v53 = vld [vmem:[%s3021_s3 + $0x158] sm:$0xff]  ;;  %v1384_v57 = vld [vmem:[%s3021_s3 + $0x140] sm:$0xff]  ;;  %v1386_v12 = vld [vmem:[%s3021_s3 + $0x150] sm:$0xff] }
 0x1ea   : > { %v692_v32 = vadd.f32 %v691_v17, %v614_v60  ;;  %v760_v63 = vpop.f32.mrb[4].mxu1  ;;  %v1350_v17 = vld [vmem:[%s3021_s3 + $0x30] sm:$0xff] }
 0x1eb   : > { %v761_v2 = vadd.f32 %v760_v63, %v690_v62  ;;  %v762_v3 = vpop.f32.mrb[5].mxu1  ;;  %v1348_v62 = vld [vmem:[%s3021_s3 + $0x20] sm:$0xff]  ;;  %v1355_v63 = vld [vmem:[%s3021_s3 + $0x58] sm:$0xff] }
 0x1ec   : > { %v763_v9 = vadd.f32 %v762_v3, %v692_v32  ;;  %v1353_v32 = vld [vmem:[%s3021_s3 + $0x48] sm:$0xff]  ;;  %v2166_v1 = vpack.c.bf16 %v1350_v17, %v1348_v62  ;;  %v1352_v3 = vld [vmem:[%s3021_s3 + $0x40] sm:$0xff]  ;;  %v1390_v62 = vld [vmem:[%s3021_s3 + $0x170] sm:$0xff] }
 0x1ed   : > { %v905_v16 = vmax.f32 %v761_v2, 0.0  ;;  %v2168_v2 = vpack.c.bf16 %v1355_v63, %v1353_v32  ;;  %v1393_v17 = vld [vmem:[%s3021_s3 + $0x188] sm:$0xff]  ;;  %v1395_v32 = vld [vmem:[%s3021_s3 + $0x198] sm:$0xff] }
 0x1ee   : > { %v906_v13 = vmax.f32 %v763_v9, 0.0  ;;  %v2170_v9 = vpack.c.bf16 %v1354_v4, %v1352_v3  ;;  %v1394_v3 = vld [vmem:[%s3021_s3 + $0x190] sm:$0xff]  ;;  %v1397_v4 = vld [vmem:[%s3021_s3 + $0x1a8] sm:$0xff] }
 0x1f0   : > { %1123 = vmatprep.mubr.f32.mxu1 %v906_v13  ;;  %1265 = vmatprep.mubr.f32.mxu0 %v906_v13  ;;  %v1358_v13 = vld [vmem:[%s3021_s3 + $0x70] sm:$0xff] }
 0x1f1   : > { %1124 = vmatmul.mubr.f32.vlgmr.msra.gmra.mrb[10].mxu1 %v905_v16  ;;  %1266 = vmatmul.mubr.f32.vlgmr.msra.gmra.mrb[2].mxu0 %v905_v16 }
 0x1f2   : > { %2103 = vmatpush1.bf16.msra.mxu1 %v2102_v8  ;;  %2150 = vmatpush3.bf16.msra.mxu0 %v2149_v14  ;;  %v2174_v8 = vpack.c.bf16 %v1358_v13, %v1356_v11  ;;  %v1361_v14 = vld [vmem:[%s3021_s3 + $0x88] sm:$0xff]  ;;  %v1398_v11 = vld [vmem:[%s3021_s3 + $0x1b0] sm:$0xff] }
 0x1f3   : > { %2105 = vmatprep.subr.bf16.mxu1 %v2104_v18  ;;  %2151 = vmatprep.subr.bf16.mxu0 %v2442_v52  ;;  %v2176_v16 = vpack.c.bf16 %v1363_v15, %v1361_v14  ;;  %v1360_v18 = vld [vmem:[%s3021_s3 + $0x80] sm:$0xff]  ;;  %v1401_v13 = vld [vmem:[%s3021_s3 + $0x1c8] sm:$0xff] }
 0x1f4   : > { %1194 = vmatprep.mubr.f32.mxu1 %v2440_v0  ;;  %1909 = vmatprep.mubr.msk.f32.mxu0 %vm2441_vm1, %v2440_v0  ;;  %v2178_v21 = vpack.c.bf16 %v1362_v19, %v1360_v18  ;;  %v1402_v18 = vld [vmem:[%s3021_s3 + $0x1d0] sm:$0xff] }
 0x1f6   : > { %2107 = vmatpush1.bf16.msra.mxu1 %v2106_v24  ;;  %2153 = vmatpush3.bf16.msra.mxu0 %v2152_v25  ;;  %v1366_v24 = vld [vmem:[%s3021_s3 + $0xb0] sm:$0xff]  ;;  %v2180_v25 = vpack.c.bf16 %v1367_v22, %v1365_v20  ;;  %v1405_v20 = vld [vmem:[%s3021_s3 + $0x1e8] sm:$0xff] }
 0x1f7   : > { %2109 = vmatprep.subr.bf16.mxu1 %v2108_v41  ;;  %2154 = vmatprep.subr.bf16.mxu0 %v2442_v52  ;;  %v1371_v41 = vld [vmem:[%s3021_s3 + $0xd8] sm:$0xff]  ;;  %v2182_v26 = vpack.c.bf16 %v1366_v24, %v1364_v23  ;;  %v1404_v23 = vld [vmem:[%s3021_s3 + $0x1e0] sm:$0xff]  ;;  %v1406_v24 = vld [vmem:[%s3021_s3 + $0x1f0] sm:$0xff] }
 0x1f8   : > { %v2184_v27 = vpack.c.bf16 %v1371_v41, %v1369_v33  ;;  %v1409_v33 = vld [vmem:[%s3021_s3 + $0x208] sm:$0xff]  ;;  %v1411_v41 = vld [vmem:[%s3021_s3 + $0x218] sm:$0xff] }
 0x1fa   : > { %2111 = vmatpush1.bf16.msra.mxu1 %v2110_v31  ;;  %2156 = vmatpush3.bf16.msra.mxu0 %v2155_v34  ;;  %v1375_v31 = vld [vmem:[%s3021_s3 + $0xf8] sm:$0xff]  ;;  %v2186_v34 = vpack.c.bf16 %v1370_v29, %v1368_v28  ;;  %v1572_v28 = vld [vmem:[%s3022_s4 + $0x8] sm:$0xff]  ;;  %v1573_v29 = vld [vmem:[%s3022_s4 + $0x10] sm:$0xff] }
 0x1fb   : > { %2113 = vmatprep.subr.bf16.mxu1 %v2112_v36  ;;  %2157 = vmatprep.subr.bf16.mxu0 %v2442_v52  ;;  %v2188_v35 = vpack.c.bf16 %v1375_v31, %v1373_v30  ;;  %v1372_v36 = vld [vmem:[%s3021_s3 + $0xe0] sm:$0xff]  ;;  %v1574_v31 = vld [vmem:[%s3022_s4 + $0x18] sm:$0xff] }
 0x1fc   : > { %v2190_v40 = vpack.c.bf16 %v1374_v37, %v1372_v36  ;;  %v1576_v36 = vld [vmem:[%s3022_s4 + $0x28] sm:$0xff] }
 0x1fe   : > { %2115 = vmatpush1.bf16.msra.mxu1 %v2114_v43  ;;  %2159 = vmatpush3.bf16.msra.mxu0 %v2158_v44  ;;  %v1376_v43 = vld [vmem:[%s3021_s3 + $0x100] sm:$0xff]  ;;  %v1378_v44 = vld [vmem:[%s3021_s3 + $0x110] sm:$0xff] }
 0x1ff   : > { %2161 = vmatprep.subr.bf16.mxu0 %v2160_v45  ;;  %2240 = vmatprep.subr.bf16.mxu1 %v2442_v52  ;;  %v1381_v45 = vld [vmem:[%s3021_s3 + $0x128] sm:$0xff] }
 0x20a   : > { %v1813_v46 = vpop.f32.mrb[6].mxu1 }
 0x20b   : > { %v1814_v47 = vpop.f32.mrb[7].mxu1 }
 0x20c   : > { %v1815_v48 = vadd.f32 %v1814_v47, %v1813_v46  ;;  %v1383_v46 = vld [vmem:[%s3021_s3 + $0x138] sm:$0xff]  ;;  %v2194_v47 = vpack.c.bf16 %v1378_v44, %v1376_v43  ;;  %v1580_v43 = vld [vmem:[%s3022_s4 + $0x48] sm:$0xff] }
 0x20e   : > { %v832_v51 = vadd.f32 %v1815_v48, %v618_v50  ;;  %v2196_v48 = vpack.c.bf16 %v1383_v46, %v1381_v45  ;;  %v1382_v50 = vld [vmem:[%s3021_s3 + $0x130] sm:$0xff]  ;;  %v1582_v46 = vld [vmem:[%s3022_s4 + $0x58] sm:$0xff] }
 0x20f   : > { %v2198_v54 = vpack.c.bf16 %v1382_v50, %v1380_v49  ;;  %v1581_v45 = vld [vmem:[%s3022_s4 + $0x50] sm:$0xff]  ;;  %v1584_v49 = vld [vmem:[%s3022_s4 + $0x68] sm:$0xff] }
 0x21a   : > { %v901_v56 = vpop.f32.mrb[8].mxu1 }
 0x21b   : > { %v902_v58 = vadd.f32 %v901_v56, %v832_v51  ;;  %v1892_v55 = vpop.f32.mrb[9].mxu1  ;;  %v1385_v51 = vld [vmem:[%s3021_s3 + $0x148] sm:$0xff] }
 0x21c   : > { %v2200_v56 = vpack.c.bf16 %v1387_v53, %v1385_v51  ;;  %v1391_v55 = vld [vmem:[%s3021_s3 + $0x178] sm:$0xff] }
 0x21d   : > { %v907_v60 = vmax.f32 %v902_v58, 0.0  ;;  %v1389_v58 = vld [vmem:[%s3021_s3 + $0x168] sm:$0xff] }
 0x21f   : > { %1770 = vmatmul.mubr.msk.f32.vlgmr.msra.gmra.mrb[10].mxu1 %vm619_vm2, %v907_v60  ;;  %1910 = vmatmul.mubr.msk.f32.vlgmr.msra.gmra.mrb[4].mxu0 %vm619_vm2, %v907_v60  ;;  %v2204_v60 = vpack.c.bf16 %v1391_v55, %v1389_v58  ;;  %v2340_v55 = vld [vmem:[%s3023_s5] sm:$0x77] }
 0x220   : > { %2163 = vmatpush1.bf16.msra.mxu0 %v2162_v59  ;;  %v2202_v59 = vpack.c.bf16 %v1386_v12, %v1384_v57  ;;  %v1035_v57 = vsub.s32 6, %v2588_v6  ;;  %v2339_v12 = vld [vmem:[%s3023_s5 + $0x8] sm:$0x7] }
 0x221   : > { %2165 = vmatprep.subr.bf16.mxu0 %v2164_v61  ;;  %v1388_v61 = vld [vmem:[%s3021_s3 + $0x160] sm:$0xff] }
 0x222   : > { %v2206_v63 = vpack.c.bf16 %v1390_v62, %v1388_v61 }
 0x224   : > { %2167 = vmatpush1.bf16.msra.mxu0 %v2166_v1  ;;  %v2208_v1 = vpack.c.bf16 %v1395_v32, %v1393_v17 }
 0x225   : > { %2169 = vmatprep.subr.bf16.mxu0 %v2168_v2  ;;  %v1392_v2 = vld [vmem:[%s3021_s3 + $0x180] sm:$0xff] }
 0x226   : > { %v2210_v7 = vpack.c.bf16 %v1394_v3, %v1392_v2 }
 0x228   : > { %2171 = vmatpush1.bf16.msra.mxu0 %v2170_v9  ;;  %v2212_v9 = vpack.c.bf16 %v1399_v5, %v1397_v4  ;;  %v1408_v5 = vld [vmem:[%s3021_s3 + $0x200] sm:$0xff] }
 0x229   : > { %2173 = vmatprep.subr.bf16.mxu0 %v2172_v10  ;;  %v1396_v10 = vld [vmem:[%s3021_s3 + $0x1a0] sm:$0xff] }
 0x22a   : > { %v2214_v14 = vpack.c.bf16 %v1398_v11, %v1396_v10  ;;  %v1413_v10 = vld [vmem:[%s3021_s3 + $0x228] sm:$0xff]  ;;  %v1415_v11 = vld [vmem:[%s3021_s3 + $0x238] sm:$0xff] }
 0x22c   : > { %2175 = vmatpush1.bf16.msra.mxu0 %v2174_v8  ;;  %v1403_v8 = vld [vmem:[%s3021_s3 + $0x1d8] sm:$0xff] }
 0x22d   : > { %2177 = vmatprep.subr.bf16.mxu0 %v2176_v16  ;;  %v2216_v15 = vpack.c.bf16 %v1403_v8, %v1401_v13  ;;  %v1400_v16 = vld [vmem:[%s3021_s3 + $0x1c0] sm:$0xff] }
 0x22e   : > { %v2218_v19 = vpack.c.bf16 %v1402_v18, %v1400_v16  ;;  %v1412_v16 = vld [vmem:[%s3021_s3 + $0x220] sm:$0xff]  ;;  %v1414_v18 = vld [vmem:[%s3021_s3 + $0x230] sm:$0xff] }
 0x230   : > { %2179 = vmatpush1.bf16.msra.mxu0 %v2178_v21  ;;  %v1407_v21 = vld [vmem:[%s3021_s3 + $0x1f8] sm:$0xff] }
 0x231   : > { %2181 = vmatprep.subr.bf16.mxu0 %v2180_v25  ;;  %v2220_v22 = vpack.c.bf16 %v1407_v21, %v1405_v20  ;;  %v2222_v25 = vpack.c.bf16 %v1406_v24, %v1404_v23  ;;  %v1419_v20 = vld [vmem:[%s3021_s3 + $0x258] sm:$0xff]  ;;  %v2230_v21 = vpack.c.bf16 %v1414_v18, %v1412_v16  ;;  %v1416_v23 = vld [vmem:[%s3021_s3 + $0x240] sm:$0xff]  ;;  %v1418_v24 = vld [vmem:[%s3021_s3 + $0x250] sm:$0xff] }
 0x234   : > { %2183 = vmatpush1.bf16.msra.mxu0 %v2182_v26  ;;  %v2224_v26 = vpack.c.bf16 %v1411_v41, %v1409_v33  ;;  %v1423_v33 = vld [vmem:[%s3021_s3 + $0x278] sm:$0xff] }
 0x235   : > { %2185 = vmatprep.subr.bf16.mxu0 %v2184_v27  ;;  %v1571_v27 = vld [vmem:[%s3022_s4] sm:$0xff] }
 0x236   : > { %v2241_v30 = vpack.c.bf16 %v1572_v28, %v1571_v27  ;;  %v1422_v27 = vld [vmem:[%s3021_s3 + $0x270] sm:$0xff] }
 0x238   : > { %2187 = vmatpush1.bf16.msra.mxu0 %v2186_v34  ;;  %2242 = vmatpush1.bf16.msra.mxu1 %v2241_v30  ;;  %v2244_v34 = vpack.c.bf16 %v1574_v31, %v1573_v29  ;;  %v1585_v30 = vld [vmem:[%s3022_s4 + $0x70] sm:$0xff]  ;;  %v1586_v31 = vld [vmem:[%s3022_s4 + $0x78] sm:$0xff] }
 0x239   : > { %2189 = vmatprep.subr.bf16.mxu0 %v2188_v35  ;;  %2243 = vmatprep.subr.bf16.mxu1 %v2442_v52  ;;  %v1575_v35 = vld [vmem:[%s3022_s4 + $0x20] sm:$0xff] }
 0x23a   : > { %v2247_v37 = vpack.c.bf16 %v1576_v36, %v1575_v35  ;;  %v1587_v35 = vld [vmem:[%s3022_s4 + $0x80] sm:$0xff]  ;;  %v1588_v36 = vld [vmem:[%s3022_s4 + $0x88] sm:$0xff] }
 0x23c   : > { %2191 = vmatpush1.bf16.msra.mxu0 %v2190_v40  ;;  %2245 = vmatpush1.bf16.msra.mxu1 %v2244_v34  ;;  %v2250_v40 = vpack.c.bf16 %v1578_v39, %v1577_v38  ;;  %v2262_v34 = vpack.c.bf16 %v1586_v31, %v1585_v30  ;;  %v1589_v38 = vld [vmem:[%s3022_s4 + $0x90] sm:$0xff]  ;;  %v1590_v39 = vld [vmem:[%s3022_s4 + $0x98] sm:$0xff] }
 0x23d   : > { %2193 = vmatprep.subr.bf16.mxu0 %v2192_v42  ;;  %2246 = vmatprep.subr.bf16.mxu1 %v2442_v52  ;;  %v1579_v42 = vld [vmem:[%s3022_s4 + $0x40] sm:$0xff] }
 0x23e   : > { %v2253_v44 = vpack.c.bf16 %v1580_v43, %v1579_v42 }
 0x240   : > { %2195 = vmatpush1.bf16.msra.mxu0 %v2194_v47  ;;  %2248 = vmatpush1.bf16.msra.mxu1 %v2247_v37  ;;  %v2256_v47 = vpack.c.bf16 %v1582_v46, %v1581_v45  ;;  %v2265_v37 = vpack.c.bf16 %v1588_v36, %v1587_v35  ;;  %v1773_v46 = vld [vmem:[%s3024_s6] ss:$0 sm:$0xff] }
 0x241   : > { %2197 = vmatprep.subr.bf16.mxu0 %v2196_v48  ;;  %2249 = vmatprep.subr.bf16.mxu1 %v2442_v52  ;;  %v1583_v48 = vld [vmem:[%s3022_s4 + $0x60] sm:$0xff] }
 0x242   : > { %v2259_v50 = vpack.c.bf16 %v1584_v49, %v1583_v48 }
 0x244   : > { %2199 = vmatpush1.bf16.msra.mxu0 %v2198_v54  ;;  %2251 = vmatpush1.bf16.msra.mxu1 %v2250_v40  ;;  %v2268_v40 = vpack.c.bf16 %v1590_v39, %v1589_v38 }
 0x245   : > { %2201 = vmatprep.subr.bf16.mxu0 %v2200_v56  ;;  %2252 = vmatprep.subr.bf16.mxu1 %v2442_v52  ;;  %v1031_v56 = vsub.s32 2, %v2588_v6 }
 0x247   : > { %v1040_v58 = vrot.slane %v2339_v12, %v1031_v56 }
 0x248   : > { %2203 = vmatpush1.bf16.msra.mxu0 %v2202_v59  ;;  %2254 = vmatpush1.bf16.msra.mxu1 %v2253_v44  ;;  %v1032_v59 = vrot.slane %v2340_v55, %v1031_v56 }
 0x249   : > { %2205 = vmatprep.subr.bf16.mxu0 %v2204_v60  ;;  %2255 = vmatprep.subr.bf16.mxu1 %v2442_v52  ;;  %v1036_v60 = vrot.slane %v2340_v55, %v1035_v57  ;;  %v1055_v61 = vrot.slane %v1040_v58, %v1031_v56 }
 0x24a   : > { %v1047_v62 = vrot.slane %v1032_v59, %v1031_v56 }
 0x24b   : > { %v1051_v17 = vrot.slane %v1036_v60, %v1031_v56 }
 0x24c   : > { %2207 = vmatpush1.bf16.msra.mxu0 %v2206_v63  ;;  %2257 = vmatpush1.bf16.msra.mxu1 %v2256_v47 }
 0x24d   : > { %2209 = vmatprep.subr.bf16.mxu0 %v2208_v1  ;;  %2258 = vmatprep.subr.bf16.mxu1 %v2442_v52 }
 0x250   : > { %2211 = vmatpush1.bf16.msra.mxu0 %v2210_v7  ;;  %2260 = vmatpush1.bf16.msra.mxu1 %v2259_v50  ;;  %v1410_v7 = vld [vmem:[%s3021_s3 + $0x210] sm:$0xff] }
 0x251   : > { %2213 = vmatprep.subr.bf16.mxu0 %v2212_v9  ;;  %2261 = vmatprep.subr.bf16.mxu1 %v2442_v52  ;;  %v2226_v8 = vpack.c.bf16 %v1410_v7, %v1408_v5 }
 0x254   : > { %2215 = vmatpush1.bf16.msra.mxu0 %v2214_v14  ;;  %2263 = vmatpush1.bf16.msra.mxu1 %v2262_v34 }
 0x255   : > { %2217 = vmatprep.subr.bf16.mxu0 %v2216_v15  ;;  %v2228_v15 = vpack.c.bf16 %v1415_v11, %v1413_v10  ;;  %2264 = vmatprep.subr.bf16.mxu1 %v2442_v52 }
 0x258   : > { %2219 = vmatpush1.bf16.msra.mxu0 %v2218_v19  ;;  %v1417_v19 = vld [vmem:[%s3021_s3 + $0x248] sm:$0xff]  ;;  %2266 = vmatpush1.bf16.msra.mxu1 %v2265_v37 }
 0x259   : > { %2221 = vmatprep.subr.bf16.mxu0 %v2220_v22  ;;  %v2232_v22 = vpack.c.bf16 %v1419_v20, %v1417_v19  ;;  %2267 = vmatprep.subr.bf16.mxu1 %v2442_v52 }
 0x25c   : > { %2223 = vmatpush1.bf16.msra.mxu0 %v2222_v25  ;;  %v1421_v25 = vld [vmem:[%s3021_s3 + $0x268] sm:$0xff]  ;;  %2269 = vmatpush1.bf16.msra.mxu1 %v2268_v40 }
 0x25d   : > { %2225 = vmatprep.subr.bf16.mxu0 %v2224_v26  ;;  %v2236_v41 = vpack.c.bf16 %v1423_v33, %v1421_v25  ;;  %v1420_v26 = vld [vmem:[%s3021_s3 + $0x260] sm:$0xff] }
 0x25e   : > { %v2238_v28 = vpack.c.bf16 %v1422_v27, %v1420_v26 }
 0x2c4   : > { %v1857_v51 = vpop.f32.mrb[2].mxu0 }
 0x2c5   : > { %v1858_v53 = vpop.f32.mrb[3].mxu0 }
 0x2c6   : > { %v1859_v54 = vadd.f32 %v1858_v53, %v1857_v51 }
 0x2c8   : > { %v1268_v32 = vadd.f32 %v1859_v54, %v1055_v61 }
 0x2f2   : > { %v1196_v63 = vpop.f32.mrb[10].mxu1  ;;  %v1337_v1 = vpop.f32.mrb[4].mxu0 }
 0x2f3   : > { %v2274_v2 = vadd.f32 %v1196_v63, %v1047_v62  ;;  %v1338_v3 = vadd.f32 %v1337_v1, %v1268_v32  ;;  %v1198_v6 = vpop.f32.mrb[11].mxu1  ;;  %v1911_v4 = vpop.f32.mrb[5].mxu0 }
 0x2f4   : > { %v2275_v9 = vadd.f32 %v1198_v6, %v1051_v17 }
 0x2f5   : > { %v1341_v14 = vmax.f32 %v2274_v2, 0.0  ;;  %v1343_v29 = vmax.f32 %v1338_v3, 0.0 }
 0x2f6   : > { %v1342_v13 = vmax.f32 %v2275_v9, 0.0 }
 0x2f8   : > { %1491 = vmatprep.mubr.f32.mxu0 %v1342_v13 }
 0x2f9   : > { %1492 = vmatmul.mubr.f32.vlgmr.msra.gmra.mrb[6].mxu0 %v1341_v14 }
 0x2fa   : > { %2227 = vmatpush1.bf16.msra.mxu0 %v2226_v8  ;;  %1562 = vmatprep.mubr.f32.mxu0 %v2440_v0  ;;  %v2234_v0 = vpack.c.bf16 %v1418_v24, %v1416_v23 }
 0x2fb   : > { %2229 = vmatprep.subr.bf16.mxu0 %v2228_v15 }
 0x2fe   : > { %2231 = vmatpush1.bf16.msra.mxu0 %v2230_v21 }
 0x2ff   : > { %2233 = vmatprep.subr.bf16.mxu0 %v2232_v22 }
 0x302   : > { %2235 = vmatpush1.bf16.msra.mxu0 %v2234_v0 }
 0x303   : > { %2237 = vmatprep.subr.bf16.mxu0 %v2236_v41 }
 0x306   : > { %2239 = vmatpush1.bf16.msra.mxu0 %v2238_v28 }
 0x309   : > { %1772 = vmatmul.mubr.msk.f32.vlgmr.msra.gmra.mrb[6].mxu0 %vm619_vm2, %v1343_v29 }
 0x3dc   : > { %v1564_v42 = vpop.f32.mrb[6].mxu0 }
 0x3dd   : > { %v1566_v43 = vpop.f32.mrb[7].mxu0 }
 0x3de   : > { %2335 = vtanh.f32 %v1566_v43 }
 0x3df   : > { %2337 = vtanh.f32 %v1564_v42 }
 0x3e8   : > { %v2336_v44 = vpop.eup %2335 }
 0x3e9   : > { %v2338_v45 = vpop.eup %2337  ;;  %1774 = vmatprep.mubr.msk.f32.mxu1 %vm1598_vm3, %v2336_v44 }
 0x3ea   : > { %1667 = vmatmul.mubr.f32.vlgmr.msra.gmra.mrb[12].mxu1 %v2338_v45 }
 0x4bd   : > { %v1668_v52 = vpop.f32.mrb[12].mxu1 }
 0x4be   : > { %v1669_v47 = vadd.f32 %v1773_v46, %v1668_v52  ;;  %v1670_v48 = vpop.f32.mrb[13].mxu1 }
 0x4c0   : > { %1672 = vst [vmem:[%s284_s16] sm:$0xff] %v1669_v47 }
 0x4c1   : > { %2382 = shalt.err (!%p2379_p7)
}
 0x4c2   : > { %s2383_s29 = scalar_lea.hbm %s2976_s15, 128  ;;  %s2387_s14 = scalar_lea.hbm %s3025_s7, 256 }
 0x4c3   : > { %p2384_p8 = scmp.ne.s32.totalorder %s2976_s15, %s2383_s29  ;;  %p2388_p1 = scmp.lt.u32.totalorder %s2976_s15, %s3025_s7 }
 0x4c4   : > { %p2389_p0 = scmp.lt.u32.totalorder %s2387_s14, %s2383_s29  ;;  %p2391_p6 = scmp.lt.u32.totalorder %s2383_s29, %s2976_s15 }
 0x4c5   : > { %p2385_p11 = pnand %p2384_p8, %p3036_p9 }
 0x4c6   : > { %p2390_p5 = por %p2389_p0, %p2388_p1 }
 0x4c7   : > { %p2386_p13 = pneg %p2385_p11 }
 0x4c8   : > { %p2392_p10 = por %p2391_p6, %p2390_p5 }
 0x4ca   : > { %p2393_p12 = pnand %p2392_p10, %p2386_p13 }
 0x4cc   : > { %2396 = shalt.err (!%p2393_p12)
}
 0x4cd   : > { %2284 = dma.vmem_to_hbm [thread:$0]  (%p3036_p9), %s2978_s18, 128, %s2976_s15, %s1674_s13  }
 0x4ce PF: > { %p2296_p2 = scmp.ge.s32.totalorder %s2435_s27, 2  ;;  %s1699_s19 = sand.u32 1, %s2423_s24  }
 0x4cf   : > { %p3037_p3 = scmp.ne.s32.totalorder %s3030_s12, 0  ;;  %s1700_s20 = scalar_lea.sflag [#allocation4], %s1699_s19 }
 0x4d1   : > { %p2291_p4 = pnand %p2296_p2, %p3037_p3 }
 0x4d3   : > { %2418 = dma.done.wait (!%p2291_p4), %s1700_s20, 128  }
 0x4d4   : > { %2420 = vsyncadd (!%p2291_p4), %s1700_s20, 4294967168  ;;  %p18_p7 = scmp.ge.s32.totalorder %s2509_s30, 4   ;;  %s3038_s24 = smov %s2427_s25 }
 0x4d5   : > { %s3039_s25 = smov %s2431_s26  ;;  %s3040_s26 = smov %s2520_s10 }
 0x4d6   : > { %s3041_s27 = smov %s2509_s30  ;;  %20 = sbr.rel (!%p18_p7) target bundleno = 4 (0x4), region = 89 }
 0x4dd   :  { %1705 = vsyncpa [#allocation3], 1 }
 0x4de   :  { %1707 = vsyncpa [#allocation3 + $0x1], 1 }
 0x4df   :  { %1708 = vsyncpa [#allocation4], 1 }
 0x4e0   :  { %1710 = vsyncpa [#allocation4 + $0x1], 1 }

</bundles_post_ra>
